<compile_context>
chip_gen: v6e
topology: v6e:2x2x1
jax: 0.10.0
libtpu: 0.0.40
codegen_flags: <defaults>
</compile_context>

<pallas_src>
import numpy as np
import jax
import jax.numpy as jnp
from jax import lax
from jax.experimental import pallas as pl
from jax.experimental.pallas import tpu as pltpu

KSIZE = 5  # conv kernel size; padding='same' -> 2 zeros on each side


# ----------------------------- in-kernel helpers (all value-based) ----------------------------- #

def _pad2(z):
    """'same' zero padding (2 rows each side) along the length/sublane axis, as a value."""
    Lz, C = z.shape
    zeros2 = jnp.zeros((2, C), z.dtype)
    return jnp.concatenate([zeros2, z, zeros2], axis=0)          # (Lz+4, C)


def _conv1_vpu(x, w_ref, b_ref):
    """First conv (Cin=1) on the VPU: 5 shifted broadcast multiply-adds.

    x: (L, 1) value; w_ref: (5, Cout); b_ref: (1, Cout).  Returns (L, Cout) f32 value.
    out[l, o] = sum_k x[l+k-2, 0] * w[k, o] + b[o]   (zeros outside [0, L)).
    """
    L = x.shape[0]
    xp = _pad2(x)                                                # (L+4, 1)
    w = w_ref[...]                                               # (5, Cout)
    acc = xp[0:L, :] * w[0:1, :]                                 # (L,1)*(1,Cout) -> (L,Cout)
    for k in range(1, KSIZE):
        acc = acc + xp[k:k + L, :] * w[k:k + 1, :]
    return acc + b_ref[...]


def _conv_mxu(z, w_ref, b_ref):
    """Conv1d(k=5, padding='same') as ONE im2col MXU matmul, cols built as a value.

    z: (Lz, Cin) value; w_ref: (5*Cin, Cout); b_ref: (1, Cout).  Returns (Lz, Cout) f32.
    cols[l, k*Cin + c] = z[l + k - 2, c] (zero outside [0, Lz)) -- matches the
    (5, Cin, Cout) -> (5*Cin, Cout) weight flattening done in the wrapper.
    """
    Lz, Cin = z.shape
    zp = _pad2(z)                                                # (Lz+4, Cin)
    cols = jnp.concatenate([zp[k:k + Lz, :] for k in range(KSIZE)], axis=1)  # (Lz, 5*Cin)
    return jnp.dot(cols, w_ref[...], preferred_element_type=jnp.float32) + b_ref[...]


def _relu_maxpool(z, buf_ref):
    """Fused ReLU + MaxPool1d(kernel=3, stride=2).

    z: (Lz, C) value; buf_ref: (Lz-2, C) exactly-sized VMEM scratch (only used for the
    stride-2 row selection).  Returns ((Lz-3)//2 + 1, C) value.
    relu(max(.)) == max(relu(.)) since relu is monotone.
    """
    Lz, C = z.shape
    Lout = (Lz - 3) // 2 + 1
    m = jnp.maximum(jnp.maximum(z[0:Lz - 2, :], z[1:Lz - 1, :]), z[2:Lz, :])
    buf_ref[...] = jnp.maximum(m, 0.0)                           # single dense store
    return buf_ref[pl.ds(0, Lout, stride=2), :]                  # single stride-2 select


# ----------------------------- fused whole-network kernel ----------------------------- #

def _global_net_kernel(
        x_ref,                                                   # (L, 1) per-sample input
        w1, b1, w2, b2, w3, b3, w4, b4,
        w5, b5, w6, b6, w7, b7, w8, b8,                          # flattened weights / biases
        o_ref,                                                   # (L_out, 128) per-sample output
        p1, p2, p3, p4):                                         # relu/pool scratch, one per stage
    # Everything below is straight-line value code: at L=64 every live activation is at most
    # ~(64, 640) f32 worth of vregs, far below the 64-vreg file, so no spill-break staging needed.
    z = _conv1_vpu(x_ref[...], w1, b1)                           # (L, 16)   VPU only
    z = _conv_mxu(z, w2, b2)                                     # (L, 16)
    z = _relu_maxpool(z, p1)                                     # (L1, 16)

    z = _conv_mxu(z, w3, b3)                                     # (L1, 32)
    z = _conv_mxu(z, w4, b4)                                     # (L1, 32)
    z = _relu_maxpool(z, p2)                                     # (L2, 32)

    z = _conv_mxu(z, w5, b5)                                     # (L2, 64)
    z = _conv_mxu(z, w6, b6)                                     # (L2, 64)
    z = _relu_maxpool(z, p3)                                     # (L3, 64)

    z = _conv_mxu(z, w7, b7)                                     # (L3, 128)
    z = _conv_mxu(z, w8, b8)                                     # (L3, 128)
    z = _relu_maxpool(z, p4)                                     # (L_out, 128)

    o_ref[...] = z                                               # lane-dense final store


# ----------------------------- wrapper ----------------------------- #

def global_network_forward(x_ncl, params):
    """Forward pass. x_ncl: (B, 1, L) in PyTorch NCL layout. Returns (B, 128, L_out)."""
    B, cin0, L = x_ncl.shape
    assert cin0 == 1
    x_nlc = jnp.transpose(x_ncl, (0, 2, 1)).astype(jnp.float32)        # (B, L, 1)

    # Flatten weights for im2col: (5, Cin, Cout) -> (5*Cin, Cout); biases -> (1, Cout).
    # (conv1 keeps (5, 16) and is consumed by the VPU path.)
    flat_args, wb_specs = [], []
    for (w, b) in params:
        k, cin, cout = w.shape
        flat_args.append(w.reshape(k * cin, cout).astype(jnp.float32))
        flat_args.append(b.reshape(1, cout).astype(jnp.float32))
        # Constant index maps -> fetched once.  (pipeline_mode=pl.Buffered(1) would drop the
        # double-buffer reservation; only matters once L-tiles compete for VMEM on v7x.)
        wb_specs.append(pl.BlockSpec((k * cin, cout), lambda bi: (0, 0)))
        wb_specs.append(pl.BlockSpec((1, cout), lambda bi: (0, 0)))

    pool = lambda l: (l - 3) // 2 + 1
    L1, L2, L3 = pool(L), pool(pool(L)), pool(pool(pool(L)))
    L_out = pool(L3)

    couts = [w.shape[2] for w, _ in params]                # [16,16,32,32,64,64,128,128]
    C_out = couts[-1]

    # Only scratch left: one exactly-sized relu/pool staging buffer per stage (~60 KiB total).
    pool_scratch = [pltpu.VMEM((l - 2, c), jnp.float32)
                    for l, c in zip([L, L1, L2, L3],
                                    [couts[1], couts[3], couts[5], couts[7]])]

    out_nlc = pl.pallas_call(
        _global_net_kernel,
        out_shape=jax.ShapeDtypeStruct((B, L_out, C_out), jnp.float32),
        grid_spec=pltpu.PrefetchScalarGridSpec(
            num_scalar_prefetch=0,
            grid=(B,),
            in_specs=[pl.BlockSpec((None, L, 1), lambda bi: (bi, 0, 0))] + wb_specs,
            out_specs=pl.BlockSpec((None, L_out, C_out), lambda bi: (bi, 0, 0)),
            scratch_shapes=pool_scratch,
        ),
        compiler_params=pltpu.CompilerParams(
            # v7x: grid length B=2 splits one sample per TensorCore; on v5e/v6e this is a
            # cheap serial loop.  For larger B, block Btile samples per step and stack them
            # into the matmul M dimension instead of growing the grid.
            dimension_semantics=("parallel",),
        ),
    )(x_nlc, *flat_args)

    return jnp.transpose(out_nlc, (0, 2, 1))               # -> NCL


# ----------------------------- params & pure-JAX reference ----------------------------- #

def init_params(key):
    specs = [(1, 16), (16, 16), (16, 32), (32, 32), (32, 64), (64, 64), (64, 128), (128, 128)]
    params = []
    for cin, cout in specs:
        key, kw, kb = jax.random.split(key, 3)
        bound = 1.0 / np.sqrt(cin * KSIZE)
        w = jax.random.uniform(kw, (KSIZE, cin, cout), jnp.float32, -bound, bound)
        b = jax.random.uniform(kb, (cout,), jnp.float32, -bound, bound)
        params.append((w, b))
    return params


def ref_forward(x_ncl, params):
    """Pure-JAX reference (XLA conv / reduce_window), NCL layout throughout."""
    def conv(x, w, b):
        wt = jnp.transpose(w, (2, 1, 0))  # (Cout, Cin, K)
        y = lax.conv_general_dilated(x, wt, window_strides=(1,), padding="SAME",
                                     dimension_numbers=("NCH", "OIH", "NCH"))
        return y + b[None, :, None]

    def relu_mp(x):
        x = jnp.maximum(x, 0.0)
        return lax.reduce_window(x, -jnp.inf, lax.max, (1, 1, 3), (1, 1, 2), "VALID")

    z = x_ncl.astype(jnp.float32)
    for i in range(4):
        z = conv(z, *params[2 * i])
        z = conv(z, *params[2 * i + 1])
        z = relu_mp(z)
    return z


# ----------------------------- main ----------------------------- #

if __name__ == "__main__":
    key = jax.random.PRNGKey(0)
    key, kx = jax.random.split(key)
    x = jax.random.normal(kx, (2, 1, 64), dtype=jnp.float32)   # (B, C_in=1, L=64), PyTorch NCL

    params = init_params(key)

    out = jax.jit(global_network_forward)(x, params)
    out = jax.block_until_ready(out)

    ref = ref_forward(x, params)
    assert out.shape == ref.shape == (2, 128, 3), (out.shape, ref.shape)
    np.testing.assert_allclose(np.asarray(out), np.asarray(ref), rtol=1e-4, atol=1e-4)

    print("KERNEL_OK")
</pallas_src>

<mosaic_0001>
module attributes {stable_mosaic.version = 11 : i64} {
  func.func @_global_net_kernel(%arg0: i32, %arg1: memref<1x64x1xf32, #tpu.memory_space<vmem>>, %arg2: memref<5x16xf32, #tpu.memory_space<vmem>>, %arg3: memref<1x16xf32, #tpu.memory_space<vmem>>, %arg4: memref<80x16xf32, #tpu.memory_space<vmem>>, %arg5: memref<1x16xf32, #tpu.memory_space<vmem>>, %arg6: memref<80x32xf32, #tpu.memory_space<vmem>>, %arg7: memref<1x32xf32, #tpu.memory_space<vmem>>, %arg8: memref<160x32xf32, #tpu.memory_space<vmem>>, %arg9: memref<1x32xf32, #tpu.memory_space<vmem>>, %arg10: memref<160x64xf32, #tpu.memory_space<vmem>>, %arg11: memref<1x64xf32, #tpu.memory_space<vmem>>, %arg12: memref<320x64xf32, #tpu.memory_space<vmem>>, %arg13: memref<1x64xf32, #tpu.memory_space<vmem>>, %arg14: memref<320x128xf32, #tpu.memory_space<vmem>>, %arg15: memref<1x128xf32, #tpu.memory_space<vmem>>, %arg16: memref<640x128xf32, #tpu.memory_space<vmem>>, %arg17: memref<1x128xf32, #tpu.memory_space<vmem>>, %arg18: memref<1x3x128xf32, #tpu.memory_space<vmem>>, %arg19: memref<62x16xf32, #tpu.memory_space<vmem>>, %arg20: memref<29x32xf32, #tpu.memory_space<vmem>>, %arg21: memref<13x64xf32, #tpu.memory_space<vmem>>, %arg22: memref<5x128xf32, #tpu.memory_space<vmem>>) attributes {dimension_semantics = [#tpu.dimension_semantics<parallel>], iteration_bounds = array<i64: 2>, scalar_prefetch = 0 : i64, scratch_operands = 4 : i64, tpu.core_type = #tpu.core_type<tc>, window_params = [{transform_indices = @transform_0, window_bounds = array<i64: 1, 64, 1>}, {pipeline_mode = #tpu.pipeline_mode<synchronous>, transform_indices = @transform_1, window_bounds = array<i64: 5, 16>}, {pipeline_mode = #tpu.pipeline_mode<synchronous>, transform_indices = @transform_2, window_bounds = array<i64: 1, 16>}, {pipeline_mode = #tpu.pipeline_mode<synchronous>, transform_indices = @transform_3, window_bounds = array<i64: 80, 16>}, {pipeline_mode = #tpu.pipeline_mode<synchronous>, transform_indices = @transform_4, window_bounds = array<i64: 1, 16>}, {pipeline_mode = #tpu.pipeline_mode<synchronous>, transform_indices = @transform_5, window_bounds = array<i64: 80, 32>}, {pipeline_mode = #tpu.pipeline_mode<synchronous>, transform_indices = @transform_6, window_bounds = array<i64: 1, 32>}, {pipeline_mode = #tpu.pipeline_mode<synchronous>, transform_indices = @transform_7, window_bounds = array<i64: 160, 32>}, {pipeline_mode = #tpu.pipeline_mode<synchronous>, transform_indices = @transform_8, window_bounds = array<i64: 1, 32>}, {pipeline_mode = #tpu.pipeline_mode<synchronous>, transform_indices = @transform_9, window_bounds = array<i64: 160, 64>}, {pipeline_mode = #tpu.pipeline_mode<synchronous>, transform_indices = @transform_10, window_bounds = array<i64: 1, 64>}, {pipeline_mode = #tpu.pipeline_mode<synchronous>, transform_indices = @transform_11, window_bounds = array<i64: 320, 64>}, {pipeline_mode = #tpu.pipeline_mode<synchronous>, transform_indices = @transform_12, window_bounds = array<i64: 1, 64>}, {pipeline_mode = #tpu.pipeline_mode<synchronous>, transform_indices = @transform_13, window_bounds = array<i64: 320, 128>}, {pipeline_mode = #tpu.pipeline_mode<synchronous>, transform_indices = @transform_14, window_bounds = array<i64: 1, 128>}, {pipeline_mode = #tpu.pipeline_mode<synchronous>, transform_indices = @transform_15, window_bounds = array<i64: 640, 128>}, {pipeline_mode = #tpu.pipeline_mode<synchronous>, transform_indices = @transform_16, window_bounds = array<i64: 1, 128>}, {transform_indices = @transform_17, window_bounds = array<i64: 1, 3, 128>}]} {
    %c0 = arith.constant 0 : index
    %c0_0 = arith.constant 0 : index
    %c0_1 = arith.constant 0 : index
    %0 = vector.load %arg1[%c0, %c0_0, %c0_1] : memref<1x64x1xf32, #tpu.memory_space<vmem>>, vector<1x64x1xf32>
    %1 = vector.shape_cast %0 : vector<1x64x1xf32> to vector<64x1xf32>
    %cst = arith.constant 0.000000e+00 : f32
    %2 = vector.broadcast %cst : f32 to vector<2x1xf32>
    %3 = tpu.concatenate %2, %1, %2 in 0 : vector<2x1xf32>, vector<64x1xf32>, vector<2x1xf32> -> vector<68x1xf32>
    %c0_2 = arith.constant 0 : index
    %c0_3 = arith.constant 0 : index
    %4 = vector.load %arg2[%c0_2, %c0_3] : memref<5x16xf32, #tpu.memory_space<vmem>>, vector<5x16xf32>
    %5 = vector.extract_strided_slice %3 {offsets = [0, 0], sizes = [64, 1], strides = [1, 1]} : vector<68x1xf32> to vector<64x1xf32>
    %6 = vector.extract_strided_slice %4 {offsets = [0, 0], sizes = [1, 16], strides = [1, 1]} : vector<5x16xf32> to vector<1x16xf32>
    %7 = vector.broadcast %5 : vector<64x1xf32> to vector<64x16xf32>
    %8 = vector.broadcast %6 : vector<1x16xf32> to vector<64x16xf32>
    %9 = arith.mulf %7, %8 : vector<64x16xf32>
    %10 = vector.extract_strided_slice %3 {offsets = [1, 0], sizes = [64, 1], strides = [1, 1]} : vector<68x1xf32> to vector<64x1xf32>
    %11 = vector.extract_strided_slice %4 {offsets = [1, 0], sizes = [1, 16], strides = [1, 1]} : vector<5x16xf32> to vector<1x16xf32>
    %12 = vector.broadcast %10 : vector<64x1xf32> to vector<64x16xf32>
    %13 = vector.broadcast %11 : vector<1x16xf32> to vector<64x16xf32>
    %14 = arith.mulf %12, %13 : vector<64x16xf32>
    %15 = arith.addf %9, %14 : vector<64x16xf32>
    %16 = vector.extract_strided_slice %3 {offsets = [2, 0], sizes = [64, 1], strides = [1, 1]} : vector<68x1xf32> to vector<64x1xf32>
    %17 = vector.extract_strided_slice %4 {offsets = [2, 0], sizes = [1, 16], strides = [1, 1]} : vector<5x16xf32> to vector<1x16xf32>
    %18 = vector.broadcast %16 : vector<64x1xf32> to vector<64x16xf32>
    %19 = vector.broadcast %17 : vector<1x16xf32> to vector<64x16xf32>
    %20 = arith.mulf %18, %19 : vector<64x16xf32>
    %21 = arith.addf %15, %20 : vector<64x16xf32>
    %22 = vector.extract_strided_slice %3 {offsets = [3, 0], sizes = [64, 1], strides = [1, 1]} : vector<68x1xf32> to vector<64x1xf32>
    %23 = vector.extract_strided_slice %4 {offsets = [3, 0], sizes = [1, 16], strides = [1, 1]} : vector<5x16xf32> to vector<1x16xf32>
    %24 = vector.broadcast %22 : vector<64x1xf32> to vector<64x16xf32>
    %25 = vector.broadcast %23 : vector<1x16xf32> to vector<64x16xf32>
    %26 = arith.mulf %24, %25 : vector<64x16xf32>
    %27 = arith.addf %21, %26 : vector<64x16xf32>
    %28 = vector.extract_strided_slice %3 {offsets = [4, 0], sizes = [64, 1], strides = [1, 1]} : vector<68x1xf32> to vector<64x1xf32>
    %29 = vector.extract_strided_slice %4 {offsets = [4, 0], sizes = [1, 16], strides = [1, 1]} : vector<5x16xf32> to vector<1x16xf32>
    %30 = vector.broadcast %28 : vector<64x1xf32> to vector<64x16xf32>
    %31 = vector.broadcast %29 : vector<1x16xf32> to vector<64x16xf32>
    %32 = arith.mulf %30, %31 : vector<64x16xf32>
    %33 = arith.addf %27, %32 : vector<64x16xf32>
    %c0_4 = arith.constant 0 : index
    %c0_5 = arith.constant 0 : index
    %34 = vector.load %arg3[%c0_4, %c0_5] : memref<1x16xf32, #tpu.memory_space<vmem>>, vector<1x16xf32>
    %35 = vector.broadcast %34 : vector<1x16xf32> to vector<64x16xf32>
    %36 = arith.addf %33, %35 : vector<64x16xf32>
    %cst_6 = arith.constant 0.000000e+00 : f32
    %37 = vector.broadcast %cst_6 : f32 to vector<2x16xf32>
    %38 = tpu.concatenate %37, %36, %37 in 0 : vector<2x16xf32>, vector<64x16xf32>, vector<2x16xf32> -> vector<68x16xf32>
    %39 = vector.extract_strided_slice %38 {offsets = [0, 0], sizes = [64, 16], strides = [1, 1]} : vector<68x16xf32> to vector<64x16xf32>
    %40 = vector.extract_strided_slice %38 {offsets = [1, 0], sizes = [64, 16], strides = [1, 1]} : vector<68x16xf32> to vector<64x16xf32>
    %41 = vector.extract_strided_slice %38 {offsets = [2, 0], sizes = [64, 16], strides = [1, 1]} : vector<68x16xf32> to vector<64x16xf32>
    %42 = vector.extract_strided_slice %38 {offsets = [3, 0], sizes = [64, 16], strides = [1, 1]} : vector<68x16xf32> to vector<64x16xf32>
    %43 = vector.extract_strided_slice %38 {offsets = [4, 0], sizes = [64, 16], strides = [1, 1]} : vector<68x16xf32> to vector<64x16xf32>
    %44 = tpu.concatenate %39, %40, %41, %42, %43 in 1 : vector<64x16xf32>, vector<64x16xf32>, vector<64x16xf32>, vector<64x16xf32>, vector<64x16xf32> -> vector<64x80xf32>
    %c0_7 = arith.constant 0 : index
    %c0_8 = arith.constant 0 : index
    %45 = vector.load %arg4[%c0_7, %c0_8] : memref<80x16xf32, #tpu.memory_space<vmem>>, vector<80x16xf32>
    %cst_9 = arith.constant dense<0.000000e+00> : vector<64x16xf32>
    %46 = tpu.matmul %44, %45, %cst_9 {dimension_numbers = #tpu.dot_dimension_numbers<[1], [0], [0], [1], [0, 0, 1, 1], [], []>} : vector<64x80xf32>, vector<80x16xf32>, vector<64x16xf32> -> vector<64x16xf32>
    %c0_10 = arith.constant 0 : index
    %c0_11 = arith.constant 0 : index
    %47 = vector.load %arg5[%c0_10, %c0_11] : memref<1x16xf32, #tpu.memory_space<vmem>>, vector<1x16xf32>
    %48 = vector.broadcast %47 : vector<1x16xf32> to vector<64x16xf32>
    %49 = arith.addf %46, %48 : vector<64x16xf32>
    %50 = vector.extract_strided_slice %49 {offsets = [0, 0], sizes = [62, 16], strides = [1, 1]} : vector<64x16xf32> to vector<62x16xf32>
    %51 = vector.extract_strided_slice %49 {offsets = [1, 0], sizes = [62, 16], strides = [1, 1]} : vector<64x16xf32> to vector<62x16xf32>
    %52 = arith.maximumf %50, %51 : vector<62x16xf32>
    %53 = vector.extract_strided_slice %49 {offsets = [2, 0], sizes = [62, 16], strides = [1, 1]} : vector<64x16xf32> to vector<62x16xf32>
    %54 = arith.maximumf %52, %53 : vector<62x16xf32>
    %cst_12 = arith.constant 0.000000e+00 : f32
    %55 = vector.broadcast %cst_12 : f32 to vector<62x16xf32>
    %56 = arith.maximumf %54, %55 : vector<62x16xf32>
    %c0_13 = arith.constant 0 : index
    %c0_14 = arith.constant 0 : index
    %57 = vector.load %arg19[%c0_13, %c0_14] : memref<62x16xf32, #tpu.memory_space<vmem>>, vector<62x16xf32>
    tpu.vector_store %arg19[%c0_13, %c0_14], %56 {strides = array<i32>} : memref<62x16xf32, #tpu.memory_space<vmem>>, vector<62x16xf32>,
    %c0_15 = arith.constant 0 : index
    %c0_16 = arith.constant 0 : index
    %58 = tpu.strided_load %arg19[%c0_15, %c0_16] {strides = array<i32: 2, 1>} : memref<62x16xf32, #tpu.memory_space<vmem>>, vector<31x16xf32>
    %cst_17 = arith.constant 0.000000e+00 : f32
    %59 = vector.broadcast %cst_17 : f32 to vector<2x16xf32>
    %60 = tpu.concatenate %59, %58, %59 in 0 : vector<2x16xf32>, vector<31x16xf32>, vector<2x16xf32> -> vector<35x16xf32>
    %61 = vector.extract_strided_slice %60 {offsets = [0, 0], sizes = [31, 16], strides = [1, 1]} : vector<35x16xf32> to vector<31x16xf32>
    %62 = vector.extract_strided_slice %60 {offsets = [1, 0], sizes = [31, 16], strides = [1, 1]} : vector<35x16xf32> to vector<31x16xf32>
    %63 = vector.extract_strided_slice %60 {offsets = [2, 0], sizes = [31, 16], strides = [1, 1]} : vector<35x16xf32> to vector<31x16xf32>
    %64 = vector.extract_strided_slice %60 {offsets = [3, 0], sizes = [31, 16], strides = [1, 1]} : vector<35x16xf32> to vector<31x16xf32>
    %65 = vector.extract_strided_slice %60 {offsets = [4, 0], sizes = [31, 16], strides = [1, 1]} : vector<35x16xf32> to vector<31x16xf32>
    %66 = tpu.concatenate %61, %62, %63, %64, %65 in 1 : vector<31x16xf32>, vector<31x16xf32>, vector<31x16xf32>, vector<31x16xf32>, vector<31x16xf32> -> vector<31x80xf32>
    %c0_18 = arith.constant 0 : index
    %c0_19 = arith.constant 0 : index
    %67 = vector.load %arg6[%c0_18, %c0_19] : memref<80x32xf32, #tpu.memory_space<vmem>>, vector<80x32xf32>
    %cst_20 = arith.constant dense<0.000000e+00> : vector<31x32xf32>
    %68 = tpu.matmul %66, %67, %cst_20 {dimension_numbers = #tpu.dot_dimension_numbers<[1], [0], [0], [1], [0, 0, 1, 1], [], []>} : vector<31x80xf32>, vector<80x32xf32>, vector<31x32xf32> -> vector<31x32xf32>
    %c0_21 = arith.constant 0 : index
    %c0_22 = arith.constant 0 : index
    %69 = vector.load %arg7[%c0_21, %c0_22] : memref<1x32xf32, #tpu.memory_space<vmem>>, vector<1x32xf32>
    %70 = vector.broadcast %69 : vector<1x32xf32> to vector<31x32xf32>
    %71 = arith.addf %68, %70 : vector<31x32xf32>
    %cst_23 = arith.constant 0.000000e+00 : f32
    %72 = vector.broadcast %cst_23 : f32 to vector<2x32xf32>
    %73 = tpu.concatenate %72, %71, %72 in 0 : vector<2x32xf32>, vector<31x32xf32>, vector<2x32xf32> -> vector<35x32xf32>
    %74 = vector.extract_strided_slice %73 {offsets = [0, 0], sizes = [31, 32], strides = [1, 1]} : vector<35x32xf32> to vector<31x32xf32>
    %75 = vector.extract_strided_slice %73 {offsets = [1, 0], sizes = [31, 32], strides = [1, 1]} : vector<35x32xf32> to vector<31x32xf32>
    %76 = vector.extract_strided_slice %73 {offsets = [2, 0], sizes = [31, 32], strides = [1, 1]} : vector<35x32xf32> to vector<31x32xf32>
    %77 = vector.extract_strided_slice %73 {offsets = [3, 0], sizes = [31, 32], strides = [1, 1]} : vector<35x32xf32> to vector<31x32xf32>
    %78 = vector.extract_strided_slice %73 {offsets = [4, 0], sizes = [31, 32], strides = [1, 1]} : vector<35x32xf32> to vector<31x32xf32>
    %79 = tpu.concatenate %74, %75, %76, %77, %78 in 1 : vector<31x32xf32>, vector<31x32xf32>, vector<31x32xf32>, vector<31x32xf32>, vector<31x32xf32> -> vector<31x160xf32>
    %c0_24 = arith.constant 0 : index
    %c0_25 = arith.constant 0 : index
    %80 = vector.load %arg8[%c0_24, %c0_25] : memref<160x32xf32, #tpu.memory_space<vmem>>, vector<160x32xf32>
    %cst_26 = arith.constant dense<0.000000e+00> : vector<31x32xf32>
    %81 = tpu.matmul %79, %80, %cst_26 {dimension_numbers = #tpu.dot_dimension_numbers<[1], [0], [0], [1], [0, 0, 1, 1], [], []>} : vector<31x160xf32>, vector<160x32xf32>, vector<31x32xf32> -> vector<31x32xf32>
    %c0_27 = arith.constant 0 : index
    %c0_28 = arith.constant 0 : index
    %82 = vector.load %arg9[%c0_27, %c0_28] : memref<1x32xf32, #tpu.memory_space<vmem>>, vector<1x32xf32>
    %83 = vector.broadcast %82 : vector<1x32xf32> to vector<31x32xf32>
    %84 = arith.addf %81, %83 : vector<31x32xf32>
    %85 = vector.extract_strided_slice %84 {offsets = [0, 0], sizes = [29, 32], strides = [1, 1]} : vector<31x32xf32> to vector<29x32xf32>
    %86 = vector.extract_strided_slice %84 {offsets = [1, 0], sizes = [29, 32], strides = [1, 1]} : vector<31x32xf32> to vector<29x32xf32>
    %87 = arith.maximumf %85, %86 : vector<29x32xf32>
    %88 = vector.extract_strided_slice %84 {offsets = [2, 0], sizes = [29, 32], strides = [1, 1]} : vector<31x32xf32> to vector<29x32xf32>
    %89 = arith.maximumf %87, %88 : vector<29x32xf32>
    %cst_29 = arith.constant 0.000000e+00 : f32
    %90 = vector.broadcast %cst_29 : f32 to vector<29x32xf32>
    %91 = arith.maximumf %89, %90 : vector<29x32xf32>
    %c0_30 = arith.constant 0 : index
    %c0_31 = arith.constant 0 : index
    %92 = vector.load %arg20[%c0_30, %c0_31] : memref<29x32xf32, #tpu.memory_space<vmem>>, vector<29x32xf32>
    tpu.vector_store %arg20[%c0_30, %c0_31], %91 {strides = array<i32>} : memref<29x32xf32, #tpu.memory_space<vmem>>, vector<29x32xf32>,
    %c0_32 = arith.constant 0 : index
    %c0_33 = arith.constant 0 : index
    %93 = tpu.strided_load %arg20[%c0_32, %c0_33] {strides = array<i32: 2, 1>} : memref<29x32xf32, #tpu.memory_space<vmem>>, vector<15x32xf32>
    %cst_34 = arith.constant 0.000000e+00 : f32
    %94 = vector.broadcast %cst_34 : f32 to vector<2x32xf32>
    %95 = tpu.concatenate %94, %93, %94 in 0 : vector<2x32xf32>, vector<15x32xf32>, vector<2x32xf32> -> vector<19x32xf32>
    %96 = vector.extract_strided_slice %95 {offsets = [0, 0], sizes = [15, 32], strides = [1, 1]} : vector<19x32xf32> to vector<15x32xf32>
    %97 = vector.extract_strided_slice %95 {offsets = [1, 0], sizes = [15, 32], strides = [1, 1]} : vector<19x32xf32> to vector<15x32xf32>
    %98 = vector.extract_strided_slice %95 {offsets = [2, 0], sizes = [15, 32], strides = [1, 1]} : vector<19x32xf32> to vector<15x32xf32>
    %99 = vector.extract_strided_slice %95 {offsets = [3, 0], sizes = [15, 32], strides = [1, 1]} : vector<19x32xf32> to vector<15x32xf32>
    %100 = vector.extract_strided_slice %95 {offsets = [4, 0], sizes = [15, 32], strides = [1, 1]} : vector<19x32xf32> to vector<15x32xf32>
    %101 = tpu.concatenate %96, %97, %98, %99, %100 in 1 : vector<15x32xf32>, vector<15x32xf32>, vector<15x32xf32>, vector<15x32xf32>, vector<15x32xf32> -> vector<15x160xf32>
    %c0_35 = arith.constant 0 : index
    %c0_36 = arith.constant 0 : index
    %102 = vector.load %arg10[%c0_35, %c0_36] : memref<160x64xf32, #tpu.memory_space<vmem>>, vector<160x64xf32>
    %cst_37 = arith.constant dense<0.000000e+00> : vector<15x64xf32>
    %103 = tpu.matmul %101, %102, %cst_37 {dimension_numbers = #tpu.dot_dimension_numbers<[1], [0], [0], [1], [0, 0, 1, 1], [], []>} : vector<15x160xf32>, vector<160x64xf32>, vector<15x64xf32> -> vector<15x64xf32>
    %c0_38 = arith.constant 0 : index
    %c0_39 = arith.constant 0 : index
    %104 = vector.load %arg11[%c0_38, %c0_39] : memref<1x64xf32, #tpu.memory_space<vmem>>, vector<1x64xf32>
    %105 = vector.broadcast %104 : vector<1x64xf32> to vector<15x64xf32>
    %106 = arith.addf %103, %105 : vector<15x64xf32>
    %cst_40 = arith.constant 0.000000e+00 : f32
    %107 = vector.broadcast %cst_40 : f32 to vector<2x64xf32>
    %108 = tpu.concatenate %107, %106, %107 in 0 : vector<2x64xf32>, vector<15x64xf32>, vector<2x64xf32> -> vector<19x64xf32>
    %109 = vector.extract_strided_slice %108 {offsets = [0, 0], sizes = [15, 64], strides = [1, 1]} : vector<19x64xf32> to vector<15x64xf32>
    %110 = vector.extract_strided_slice %108 {offsets = [1, 0], sizes = [15, 64], strides = [1, 1]} : vector<19x64xf32> to vector<15x64xf32>
    %111 = vector.extract_strided_slice %108 {offsets = [2, 0], sizes = [15, 64], strides = [1, 1]} : vector<19x64xf32> to vector<15x64xf32>
    %112 = vector.extract_strided_slice %108 {offsets = [3, 0], sizes = [15, 64], strides = [1, 1]} : vector<19x64xf32> to vector<15x64xf32>
    %113 = vector.extract_strided_slice %108 {offsets = [4, 0], sizes = [15, 64], strides = [1, 1]} : vector<19x64xf32> to vector<15x64xf32>
    %114 = tpu.concatenate %109, %110, %111, %112, %113 in 1 : vector<15x64xf32>, vector<15x64xf32>, vector<15x64xf32>, vector<15x64xf32>, vector<15x64xf32> -> vector<15x320xf32>
    %c0_41 = arith.constant 0 : index
    %c0_42 = arith.constant 0 : index
    %115 = vector.load %arg12[%c0_41, %c0_42] : memref<320x64xf32, #tpu.memory_space<vmem>>, vector<320x64xf32>
    %cst_43 = arith.constant dense<0.000000e+00> : vector<15x64xf32>
    %116 = tpu.matmul %114, %115, %cst_43 {dimension_numbers = #tpu.dot_dimension_numbers<[1], [0], [0], [1], [0, 0, 1, 1], [], []>} : vector<15x320xf32>, vector<320x64xf32>, vector<15x64xf32> -> vector<15x64xf32>
    %c0_44 = arith.constant 0 : index
    %c0_45 = arith.constant 0 : index
    %117 = vector.load %arg13[%c0_44, %c0_45] : memref<1x64xf32, #tpu.memory_space<vmem>>, vector<1x64xf32>
    %118 = vector.broadcast %117 : vector<1x64xf32> to vector<15x64xf32>
    %119 = arith.addf %116, %118 : vector<15x64xf32>
    %120 = vector.extract_strided_slice %119 {offsets = [0, 0], sizes = [13, 64], strides = [1, 1]} : vector<15x64xf32> to vector<13x64xf32>
    %121 = vector.extract_strided_slice %119 {offsets = [1, 0], sizes = [13, 64], strides = [1, 1]} : vector<15x64xf32> to vector<13x64xf32>
    %122 = arith.maximumf %120, %121 : vector<13x64xf32>
    %123 = vector.extract_strided_slice %119 {offsets = [2, 0], sizes = [13, 64], strides = [1, 1]} : vector<15x64xf32> to vector<13x64xf32>
    %124 = arith.maximumf %122, %123 : vector<13x64xf32>
    %cst_46 = arith.constant 0.000000e+00 : f32
    %125 = vector.broadcast %cst_46 : f32 to vector<13x64xf32>
    %126 = arith.maximumf %124, %125 : vector<13x64xf32>
    %c0_47 = arith.constant 0 : index
    %c0_48 = arith.constant 0 : index
    %127 = vector.load %arg21[%c0_47, %c0_48] : memref<13x64xf32, #tpu.memory_space<vmem>>, vector<13x64xf32>
    tpu.vector_store %arg21[%c0_47, %c0_48], %126 {strides = array<i32>} : memref<13x64xf32, #tpu.memory_space<vmem>>, vector<13x64xf32>,
    %c0_49 = arith.constant 0 : index
    %c0_50 = arith.constant 0 : index
    %128 = tpu.strided_load %arg21[%c0_49, %c0_50] {strides = array<i32: 2, 1>} : memref<13x64xf32, #tpu.memory_space<vmem>>, vector<7x64xf32>
    %cst_51 = arith.constant 0.000000e+00 : f32
    %129 = vector.broadcast %cst_51 : f32 to vector<2x64xf32>
    %130 = tpu.concatenate %129, %128, %129 in 0 : vector<2x64xf32>, vector<7x64xf32>, vector<2x64xf32> -> vector<11x64xf32>
    %131 = vector.extract_strided_slice %130 {offsets = [0, 0], sizes = [7, 64], strides = [1, 1]} : vector<11x64xf32> to vector<7x64xf32>
    %132 = vector.extract_strided_slice %130 {offsets = [1, 0], sizes = [7, 64], strides = [1, 1]} : vector<11x64xf32> to vector<7x64xf32>
    %133 = vector.extract_strided_slice %130 {offsets = [2, 0], sizes = [7, 64], strides = [1, 1]} : vector<11x64xf32> to vector<7x64xf32>
    %134 = vector.extract_strided_slice %130 {offsets = [3, 0], sizes = [7, 64], strides = [1, 1]} : vector<11x64xf32> to vector<7x64xf32>
    %135 = vector.extract_strided_slice %130 {offsets = [4, 0], sizes = [7, 64], strides = [1, 1]} : vector<11x64xf32> to vector<7x64xf32>
    %136 = tpu.concatenate %131, %132, %133, %134, %135 in 1 : vector<7x64xf32>, vector<7x64xf32>, vector<7x64xf32>, vector<7x64xf32>, vector<7x64xf32> -> vector<7x320xf32>
    %c0_52 = arith.constant 0 : index
    %c0_53 = arith.constant 0 : index
    %137 = vector.load %arg14[%c0_52, %c0_53] : memref<320x128xf32, #tpu.memory_space<vmem>>, vector<320x128xf32>
    %cst_54 = arith.constant dense<0.000000e+00> : vector<7x128xf32>
    %138 = tpu.matmul %136, %137, %cst_54 {dimension_numbers = #tpu.dot_dimension_numbers<[1], [0], [0], [1], [0, 0, 1, 1], [], []>} : vector<7x320xf32>, vector<320x128xf32>, vector<7x128xf32> -> vector<7x128xf32>
    %c0_55 = arith.constant 0 : index
    %c0_56 = arith.constant 0 : index
    %139 = vector.load %arg15[%c0_55, %c0_56] : memref<1x128xf32, #tpu.memory_space<vmem>>, vector<1x128xf32>
    %140 = vector.broadcast %139 : vector<1x128xf32> to vector<7x128xf32>
    %141 = arith.addf %138, %140 : vector<7x128xf32>
    %cst_57 = arith.constant 0.000000e+00 : f32
    %142 = vector.broadcast %cst_57 : f32 to vector<2x128xf32>
    %143 = tpu.concatenate %142, %141, %142 in 0 : vector<2x128xf32>, vector<7x128xf32>, vector<2x128xf32> -> vector<11x128xf32>
    %144 = vector.extract_strided_slice %143 {offsets = [0, 0], sizes = [7, 128], strides = [1, 1]} : vector<11x128xf32> to vector<7x128xf32>
    %145 = vector.extract_strided_slice %143 {offsets = [1, 0], sizes = [7, 128], strides = [1, 1]} : vector<11x128xf32> to vector<7x128xf32>
    %146 = vector.extract_strided_slice %143 {offsets = [2, 0], sizes = [7, 128], strides = [1, 1]} : vector<11x128xf32> to vector<7x128xf32>
    %147 = vector.extract_strided_slice %143 {offsets = [3, 0], sizes = [7, 128], strides = [1, 1]} : vector<11x128xf32> to vector<7x128xf32>
    %148 = vector.extract_strided_slice %143 {offsets = [4, 0], sizes = [7, 128], strides = [1, 1]} : vector<11x128xf32> to vector<7x128xf32>
    %149 = tpu.concatenate %144, %145, %146, %147, %148 in 1 : vector<7x128xf32>, vector<7x128xf32>, vector<7x128xf32>, vector<7x128xf32>, vector<7x128xf32> -> vector<7x640xf32>
    %c0_58 = arith.constant 0 : index
    %c0_59 = arith.constant 0 : index
    %150 = vector.load %arg16[%c0_58, %c0_59] : memref<640x128xf32, #tpu.memory_space<vmem>>, vector<640x128xf32>
    %cst_60 = arith.constant dense<0.000000e+00> : vector<7x128xf32>
    %151 = tpu.matmul %149, %150, %cst_60 {dimension_numbers = #tpu.dot_dimension_numbers<[1], [0], [0], [1], [0, 0, 1, 1], [], []>} : vector<7x640xf32>, vector<640x128xf32>, vector<7x128xf32> -> vector<7x128xf32>
    %c0_61 = arith.constant 0 : index
    %c0_62 = arith.constant 0 : index
    %152 = vector.load %arg17[%c0_61, %c0_62] : memref<1x128xf32, #tpu.memory_space<vmem>>, vector<1x128xf32>
    %153 = vector.broadcast %152 : vector<1x128xf32> to vector<7x128xf32>
    %154 = arith.addf %151, %153 : vector<7x128xf32>
    %155 = vector.extract_strided_slice %154 {offsets = [0, 0], sizes = [5, 128], strides = [1, 1]} : vector<7x128xf32> to vector<5x128xf32>
    %156 = vector.extract_strided_slice %154 {offsets = [1, 0], sizes = [5, 128], strides = [1, 1]} : vector<7x128xf32> to vector<5x128xf32>
    %157 = arith.maximumf %155, %156 : vector<5x128xf32>
    %158 = vector.extract_strided_slice %154 {offsets = [2, 0], sizes = [5, 128], strides = [1, 1]} : vector<7x128xf32> to vector<5x128xf32>
    %159 = arith.maximumf %157, %158 : vector<5x128xf32>
    %cst_63 = arith.constant 0.000000e+00 : f32
    %160 = vector.broadcast %cst_63 : f32 to vector<5x128xf32>
    %161 = arith.maximumf %159, %160 : vector<5x128xf32>
    %c0_64 = arith.constant 0 : index
    %c0_65 = arith.constant 0 : index
    %162 = vector.load %arg22[%c0_64, %c0_65] : memref<5x128xf32, #tpu.memory_space<vmem>>, vector<5x128xf32>
    tpu.vector_store %arg22[%c0_64, %c0_65], %161 {strides = array<i32>} : memref<5x128xf32, #tpu.memory_space<vmem>>, vector<5x128xf32>,
    %c0_66 = arith.constant 0 : index
    %c0_67 = arith.constant 0 : index
    %163 = tpu.strided_load %arg22[%c0_66, %c0_67] {strides = array<i32: 2, 1>} : memref<5x128xf32, #tpu.memory_space<vmem>>, vector<3x128xf32>
    %c0_68 = arith.constant 0 : index
    %c0_69 = arith.constant 0 : index
    %c0_70 = arith.constant 0 : index
    %164 = vector.load %arg18[%c0_68, %c0_69, %c0_70] : memref<1x3x128xf32, #tpu.memory_space<vmem>>, vector<1x3x128xf32>
    %165 = vector.shape_cast %164 : vector<1x3x128xf32> to vector<3x128xf32>
    %166 = vector.shape_cast %163 : vector<3x128xf32> to vector<1x3x128xf32>
    tpu.vector_store %arg18[%c0_68, %c0_69, %c0_70], %166 {strides = array<i32>} : memref<1x3x128xf32, #tpu.memory_space<vmem>>, vector<1x3x128xf32>,
    return
  }
  func.func @transform_0(%arg0: i32) -> (i32, i32, i32) {
    %c0_i32 = arith.constant 0 : i32
    %c0_i32_0 = arith.constant 0 : i32
    %c0_i32_1 = arith.constant 0 : i32
    return %arg0, %c0_i32, %c0_i32_0 : i32, i32, i32
  }
  func.func @transform_1(%arg0: i32) -> (i32, i32) {
    %c0_i32 = arith.constant 0 : i32
    %c0_i32_0 = arith.constant 0 : i32
    %c0_i32_1 = arith.constant 0 : i32
    return %c0_i32, %c0_i32_0 : i32, i32
  }
  func.func @transform_2(%arg0: i32) -> (i32, i32) {
    %c0_i32 = arith.constant 0 : i32
    %c0_i32_0 = arith.constant 0 : i32
    %c0_i32_1 = arith.constant 0 : i32
    return %c0_i32, %c0_i32_0 : i32, i32
  }
  func.func @transform_3(%arg0: i32) -> (i32, i32) {
    %c0_i32 = arith.constant 0 : i32
    %c0_i32_0 = arith.constant 0 : i32
    %c0_i32_1 = arith.constant 0 : i32
    return %c0_i32, %c0_i32_0 : i32, i32
  }
  func.func @transform_4(%arg0: i32) -> (i32, i32) {
    %c0_i32 = arith.constant 0 : i32
    %c0_i32_0 = arith.constant 0 : i32
    %c0_i32_1 = arith.constant 0 : i32
    return %c0_i32, %c0_i32_0 : i32, i32
  }
  func.func @transform_5(%arg0: i32) -> (i32, i32) {
    %c0_i32 = arith.constant 0 : i32
    %c0_i32_0 = arith.constant 0 : i32
    %c0_i32_1 = arith.constant 0 : i32
    return %c0_i32, %c0_i32_0 : i32, i32
  }
  func.func @transform_6(%arg0: i32) -> (i32, i32) {
    %c0_i32 = arith.constant 0 : i32
    %c0_i32_0 = arith.constant 0 : i32
    %c0_i32_1 = arith.constant 0 : i32
    return %c0_i32, %c0_i32_0 : i32, i32
  }
  func.func @transform_7(%arg0: i32) -> (i32, i32) {
    %c0_i32 = arith.constant 0 : i32
    %c0_i32_0 = arith.constant 0 : i32
    %c0_i32_1 = arith.constant 0 : i32
    return %c0_i32, %c0_i32_0 : i32, i32
  }
  func.func @transform_8(%arg0: i32) -> (i32, i32) {
    %c0_i32 = arith.constant 0 : i32
    %c0_i32_0 = arith.constant 0 : i32
    %c0_i32_1 = arith.constant 0 : i32
    return %c0_i32, %c0_i32_0 : i32, i32
  }
  func.func @transform_9(%arg0: i32) -> (i32, i32) {
    %c0_i32 = arith.constant 0 : i32
    %c0_i32_0 = arith.constant 0 : i32
    %c0_i32_1 = arith.constant 0 : i32
    return %c0_i32, %c0_i32_0 : i32, i32
  }
  func.func @transform_10(%arg0: i32) -> (i32, i32) {
    %c0_i32 = arith.constant 0 : i32
    %c0_i32_0 = arith.constant 0 : i32
    %c0_i32_1 = arith.constant 0 : i32
    return %c0_i32, %c0_i32_0 : i32, i32
  }
  func.func @transform_11(%arg0: i32) -> (i32, i32) {
    %c0_i32 = arith.constant 0 : i32
    %c0_i32_0 = arith.constant 0 : i32
    %c0_i32_1 = arith.constant 0 : i32
    return %c0_i32, %c0_i32_0 : i32, i32
  }
  func.func @transform_12(%arg0: i32) -> (i32, i32) {
    %c0_i32 = arith.constant 0 : i32
    %c0_i32_0 = arith.constant 0 : i32
    %c0_i32_1 = arith.constant 0 : i32
    return %c0_i32, %c0_i32_0 : i32, i32
  }
  func.func @transform_13(%arg0: i32) -> (i32, i32) {
    %c0_i32 = arith.constant 0 : i32
    %c0_i32_0 = arith.constant 0 : i32
    %c0_i32_1 = arith.constant 0 : i32
    return %c0_i32, %c0_i32_0 : i32, i32
  }
  func.func @transform_14(%arg0: i32) -> (i32, i32) {
    %c0_i32 = arith.constant 0 : i32
    %c0_i32_0 = arith.constant 0 : i32
    %c0_i32_1 = arith.constant 0 : i32
    return %c0_i32, %c0_i32_0 : i32, i32
  }
  func.func @transform_15(%arg0: i32) -> (i32, i32) {
    %c0_i32 = arith.constant 0 : i32
    %c0_i32_0 = arith.constant 0 : i32
    %c0_i32_1 = arith.constant 0 : i32
    return %c0_i32, %c0_i32_0 : i32, i32
  }
  func.func @transform_16(%arg0: i32) -> (i32, i32) {
    %c0_i32 = arith.constant 0 : i32
    %c0_i32_0 = arith.constant 0 : i32
    %c0_i32_1 = arith.constant 0 : i32
    return %c0_i32, %c0_i32_0 : i32, i32
  }
  func.func @transform_17(%arg0: i32) -> (i32, i32, i32) {
    %c0_i32 = arith.constant 0 : i32
    %c0_i32_0 = arith.constant 0 : i32
    %c0_i32_1 = arith.constant 0 : i32
    return %arg0, %c0_i32, %c0_i32_0 : i32, i32, i32
  }
}

</mosaic_0001>

<bundles_post_ra>
// kernel: global_network_forward.1
= control target key start
LH: loop header
LB: loop body
LE: loop exit
PB: predicated region body
PF: predicated region fallthrough
CT: control target
= control target key end

     0   :  { %s4788_s0 = inlined_call_operand.vmem [shape: f32[2,64,1], index: 0, kind: input, shape index: {}]   ;;  %s4789_s1 = inlined_call_operand.vmem [shape: f32[5,16], index: 1, kind: input, shape index: {}]   ;;  %s4790_s2 = inlined_call_operand.vmem [shape: f32[1,16], index: 2, kind: input, shape index: {}]   ;;  %s4791_s3 = inlined_call_operand.hbm [shape: f32[80,16], index: 3, kind: input, shape index: {}]   ;;  %s4792_s4 = inlined_call_operand.vmem [shape: f32[1,16], index: 4, kind: input, shape index: {}]   ;;  %s4793_s5 = inlined_call_operand.hbm [shape: f32[80,32], index: 5, kind: input, shape index: {}]   ;;  %s4794_s6 = inlined_call_operand.vmem [shape: f32[1,32], index: 6, kind: input, shape index: {}]   ;;  %s4795_s7 = inlined_call_operand.vmem [shape: f32[160,32], index: 7, kind: input, shape index: {}]   ;;  %s4796_s8 = inlined_call_operand.vmem [shape: f32[1,32], index: 8, kind: input, shape index: {}]   ;;  %s4797_s9 = inlined_call_operand.hbm [shape: f32[160,64], index: 9, kind: input, shape index: {}]   ;;  %s4798_s10 = inlined_call_operand.vmem [shape: f32[1,64], index: 10, kind: input, shape index: {}]   ;;  %s4799_s11 = inlined_call_operand.hbm [shape: f32[320,64], index: 11, kind: input, shape index: {}]   ;;  %s4800_s12 = inlined_call_operand.vmem [shape: f32[1,64], index: 12, kind: input, shape index: {}]   ;;  %s4801_s13 = inlined_call_operand.hbm [shape: f32[320,128], index: 13, kind: input, shape index: {}]   ;;  %s4802_s14 = inlined_call_operand.vmem [shape: f32[1,128], index: 14, kind: input, shape index: {}]   ;;  %s4803_s15 = inlined_call_operand.hbm [shape: f32[640,128], index: 15, kind: input, shape index: {}]   ;;  %s4804_s16 = inlined_call_operand.vmem [shape: f32[1,128], index: 16, kind: input, shape index: {}]   ;;  %s4805_s17 = inlined_call_operand.vmem [shape: f32[2,3,128], index: 17, kind: output, shape index: {}]  }
   0x1   :  { %4806 = sst [smem:[#allocation20_spill]] %s4788_s0 }
   0x2   :  { %4807 = sst [smem:[#allocation21_spill]] %s4789_s1 }
   0x3   :  { %4808 = sst [smem:[#allocation22_spill]] %s4791_s3 }
   0x4   :  { %22 = vsyncpa [#allocation7], 0 }
   0x5   :  { %23 = vsyncpa [#allocation9], 0 }
   0x6   :  { %24 = vsyncpa [#allocation12], 0 }
   0x7   :  { %25 = vsyncpa [#allocation15], 0  ;;  %s3821_s24 = smov 0  }
   0x8 LB: > { %s3827_s25 = sadd.s32 4294967295, %s3713_s24   ;;  %p3030_p0 = scmp.ge.s32.totalorder %s3713_s24, 1  ;;  %s3713_s24 = sphi %s3821_s24, %s31_s24  }
   0x9   : > { %p424_p1 = scmp.lt.s32.totalorder %s3713_s24, 3  ;;  %p3467_p2 = scmp.eq.s32.totalorder %s3827_s25, 0 }
   0xa   : > { %s3715_s27 = smov [#allocation8]   ;;  %s3716_s29 = smov [#allocation11]  }
   0xb   : > { %p3832_p3 = pnand %p3030_p0, %p424_p1  ;;  %s458_s28 = sshll.u32 %s3715_s27, 4  ;;  %s459_s28 = int_to_ptr.vmem [resolvable:$true] %s458_s28 }
   0xc   : > { %s496_s0 = sshll.u32 %s3716_s29, 4  ;;  %s3717_s18 = smov [#allocation6]   ;;  %s3838_s0 = int_to_ptr.vmem [resolvable:$true] %s496_s0 }
   0xd   : > { %p3448_p4 = pneg %p3832_p3  ;;  %s442_s19 = sshll.u32 %s3717_s18, 4  ;;  %s3846_s19 = int_to_ptr.vmem [resolvable:$true] %s442_s19 }
   0xe   : > { %s3718_s1 = smov [#allocation10]   ;;  %s3546_s22 = scalar_lea.vmem %s459_s28, 1280 }
   0xf   : > { %p3842_p5 = pnand %p3467_p2, %p3448_p4  ;;  %s3848_s20 = sshll.u32 %s3718_s1, 4  ;;  %s481_s20 = int_to_ptr.vmem [resolvable:$true] %s3848_s20 }
  0x10   : > { %p3547_p7 = scmp.ne.s32.totalorder %s459_s28, %s3546_s22  ;;  %p3554_p10 = scmp.lt.s32.totalorder %s459_s28, %s459_s28 }
  0x11   : > { %p3852_p6 = pneg %p3842_p5  ;;  %p3555_p11 = scmp.lt.s32.totalorder %s3546_s22, %s3546_s22 }
  0x13   : > { %p3549_p8 = pnand %p3547_p7, %p3852_p6  ;;  %p3556_p12 = por %p3555_p11, %p3554_p10 }
  0x15   : > { %p3550_p9 = pneg %p3549_p8 }
  0x17   : > { %p3557_p13 = pnand %p3556_p12, %p3550_p9 }
  0x19   : > { %3560 = shalt.err (!%p3557_p13)
}
  0x1a   : > { %s3719_s23 = smov 128   ;;  %s3720_s27 = smov 8  }
  0x1b   : > { %3454 = dma.hbm_to_vmem [thread:$0]  (!%p3842_p5), %s4793_s5, 1280, %s459_s28, [#allocation9], %s3719_s23, %s3719_s23, %s3720_s27  }
  0x1c   : > { %s3572_s1 = scalar_lea.vmem %s3838_s0, 5120  ;;  %p3580_p7 = scmp.lt.s32.totalorder %s3838_s0, %s3838_s0 }
  0x1d   : > { %p3573_p0 = scmp.ne.s32.totalorder %s3838_s0, %s3572_s1  ;;  %p3581_p8 = scmp.lt.s32.totalorder %s3572_s1, %s3572_s1 }
  0x1f   : > { %p3575_p1 = pnand %p3573_p0, %p3852_p6  ;;  %p3582_p9 = por %p3581_p8, %p3580_p7 }
  0x21   : > { %p3576_p4 = pneg %p3575_p1 }
  0x23   : > { %p3583_p10 = pnand %p3582_p9, %p3576_p4 }
  0x25   : > { %3586 = shalt.err (!%p3583_p10)
}
  0x26   : > { %3460 = dma.hbm_to_vmem [thread:$0]  (!%p3842_p5), %s4799_s11, 5120, %s3838_s0, [#allocation12], %s3719_s23, %s3719_s23, %s3720_s27  }
  0x27   : > { %s3598_s28 = scalar_lea.vmem %s3846_s19, 1280  ;;  %p3606_p0 = scmp.lt.s32.totalorder %s3846_s19, %s3846_s19 }
  0x28   : > { %p3599_p11 = scmp.ne.s32.totalorder %s3846_s19, %s3598_s28  ;;  %p3607_p1 = scmp.lt.s32.totalorder %s3598_s28, %s3598_s28 }
  0x2a   : > { %p3601_p12 = pnand %p3599_p11, %p3852_p6  ;;  %p3608_p4 = por %p3607_p1, %p3606_p0 }
  0x2c   : > { %p3602_p13 = pneg %p3601_p12 }
  0x2e   : > { %p3609_p7 = pnand %p3608_p4, %p3602_p13 }
  0x30   : > { %3612 = shalt.err (!%p3609_p7)
}
  0x31   : > { %s4812_s3 = sld [smem:[#allocation22_spill]]  ;;  %s3624_s0 = scalar_lea.vmem %s481_s20, 2560 }
  0x32   : > { %p3625_p8 = scmp.ne.s32.totalorder %s481_s20, %s3624_s0  ;;  %p3632_p11 = scmp.lt.s32.totalorder %s481_s20, %s481_s20 }
  0x33   : > { %p3633_p12 = scmp.lt.s32.totalorder %s3624_s0, %s3624_s0 }
  0x34   : > { %p3627_p9 = pnand %p3625_p8, %p3852_p6 }
  0x35   : > { %p3634_p13 = por %p3633_p12, %p3632_p11 }
  0x36   : > { %p3628_p10 = pneg %p3627_p9 }
  0x37   : > { %3451 = dma.hbm_to_vmem [thread:$0]  (!%p3842_p5), %s4812_s3, 1280, %s3846_s19, [#allocation7], %s3719_s23, %s3719_s23, %s3720_s27  }
  0x38   : > { %p3635_p0 = pnand %p3634_p13, %p3628_p10 }
  0x3a   : > { %3638 = shalt.err (!%p3635_p0)
}
  0x3b   : > { %3457 = dma.hbm_to_vmem [thread:$0]  (!%p3842_p5), %s4797_s9, 2560, %s481_s20, [#allocation9], %s3719_s23, %s3719_s23, %s3720_s27  }
  0x3c   : > { %s3721_s19 = smov [#allocation13]   ;;  %s3722_s18 = smov [#allocation14]  }
  0x3d   : > { %s512_s28 = sshll.u32 %s3721_s19, 4  ;;  %s528_s1 = sshll.u32 %s3722_s18, 4  ;;  %s513_s28 = int_to_ptr.vmem [resolvable:$true] %s512_s28  ;;  %s529_s1 = int_to_ptr.vmem [resolvable:$true] %s528_s1 }
  0x3e   : > { %s3650_s3 = scalar_lea.vmem %s513_s28, 5120  ;;  %p3658_p8 = scmp.lt.s32.totalorder %s513_s28, %s513_s28 }
  0x3f   : > { %p3651_p1 = scmp.ne.s32.totalorder %s513_s28, %s3650_s3  ;;  %p3659_p9 = scmp.lt.s32.totalorder %s3650_s3, %s3650_s3 }
  0x41   : > { %p3653_p4 = pnand %p3651_p1, %p3852_p6  ;;  %p3660_p10 = por %p3659_p9, %p3658_p8 }
  0x43   : > { %p3654_p7 = pneg %p3653_p4 }
  0x45   : > { %p3661_p11 = pnand %p3660_p10, %p3654_p7 }
  0x47   : > { %3664 = shalt.err (!%p3661_p11)
}
  0x48   : > { %3463 = dma.hbm_to_vmem [thread:$0]  (!%p3842_p5), %s4801_s13, 5120, %s513_s28, [#allocation12], %s3719_s23, %s3719_s23, %s3720_s27  }
  0x49   : > { %s3676_s22 = scalar_lea.vmem %s529_s1, 10240  ;;  %p3684_p1 = scmp.lt.s32.totalorder %s529_s1, %s529_s1 }
  0x4a   : > { %p3677_p12 = scmp.ne.s32.totalorder %s529_s1, %s3676_s22  ;;  %p3685_p4 = scmp.lt.s32.totalorder %s3676_s22, %s3676_s22 }
  0x4c   : > { %p3679_p13 = pnand %p3677_p12, %p3852_p6  ;;  %p3686_p7 = por %p3685_p4, %p3684_p1 }
  0x4e   : > { %p3680_p0 = pneg %p3679_p13 }
  0x50   : > { %p3687_p8 = pnand %p3686_p7, %p3680_p0 }
  0x52   : > { %3690 = shalt.err (!%p3687_p8)
}
  0x53   : > { %3466 = dma.hbm_to_vmem [thread:$0]  (!%p3842_p5), %s4803_s15, 10240, %s529_s1, [#allocation15], %s3719_s23, %s3719_s23, %s3720_s27  }
  0x54   : > { %555 = sbr.rel (%p3832_p3) target bundleno = 2619 (0xa3b), region = 88 }
  0x59   : > { %3696 = dma.done.wait (%p3467_p2), [#allocation7], 1280  }
  0x5a   : > { %3698 = vsyncadd (%p3467_p2), [#allocation7], 4294966016 }
  0x5b   : > { %3700 = dma.done.wait (%p3467_p2), [#allocation9], 3840  }
  0x5c   : > { %3702 = vsyncadd (%p3467_p2), [#allocation9], 4294963456 }
  0x5d   : > { %3704 = dma.done.wait (%p3467_p2), [#allocation12], 10240  }
  0x5e   : > { %3706 = vsyncadd (%p3467_p2), [#allocation12], 4294957056 }
  0x5f   : > { %3708 = dma.done.wait (%p3467_p2), [#allocation15], 10240  }
  0x60   : > { %3710 = vsyncadd (%p3467_p2), [#allocation15], 4294957056  ;;  %p626_p3 = scmp.lt.s32.totalorder %s3827_s25, 1  ;;  %v3723_v0 = vmov 0   ;;  %s4813_s23 = sld [smem:[#allocation20_spill]]  ;;  %vm651_vm0 = vcmask 1041408   ;;  %v705_v28 = vlaneseq }
  0x61   : > { %3504 = vset.pattern.permute.xlu1 %v3723_v0  ;;  %3503 = vset.pattern.permute.xlu0 %v3723_v0  ;;  %v1206_v26 = vld [vmem:[#allocation6 + $0x48] sm:$0xff]  ;;  %v1205_v27 = vld [vmem:[#allocation6 + $0x40] sm:$0xff]  ;;  %s4814_s18 = sld [smem:[#allocation21_spill]]  ;;  %vm744_vm1 = vcmask 1046528   ;;  %vm800_vm2 = vcmask 1045504   ;;  %vm856_vm3 = vcmask 1044480  }
  0x62   : > { %s4816_s25 = smov (!%p626_p3, %s3827_s25), 1  ;;  %3293 = vmatprep.subr.mxu0 %v1206_v26  ;;  %v706_v29 = vshrl.u32 %v705_v28, 7  ;;  %vm912_vm4 = vcmask 1043456   ;;  %s3724_s0 = smov 16   ;;  %vm1161_vm5 = vcmask 130048   ;;  %vm1170_vm6 = vcmask 261120  }
  0x63   : > { %s3081_s26 = sshll.u32 %s4816_s25, 6  ;;  %3294 = vmatpush3.msra.mxu0 %v1206_v26  ;;  %s3725_s22 = smov 32   ;;  %vm1179_vm7 = vcmask 392192   ;;  %vm1188_vm8 = vcmask 523264   ;;  %vm1214_vm9 = vcmask 654336   ;;  %vm1429_vm10 = vcmask 128000  }
  0x64   : > { %3295 = vmatprep.subr.mxu0 %v1205_v27  ;;  %v724_v30 = vsub.s32 1, %v706_v29  ;;  %v780_v35 = vsub.s32 2, %v706_v29  ;;  %v836_v36 = vsub.s32 3, %v706_v29  ;;  %v707_v37 = vsub.s32 0, %v706_v29  ;;  %s3726_s3 = smov 48   ;;  %s3727_s29 = smov 64  }
  0x65   : > { %3296 = vmatpush3.msra.mxu0 %v1205_v27  ;;  %v892_v40 = vsub.s32 4, %v706_v29  ;;  %vm1455_vm11 = vcmask 1040384   ;;  %s3729_s1 = smov 96   ;;  %vm1769_vm12 = vcmask 785408   ;;  %vm1935_vm13 = vcmask 258048   ;;  %s3047_s19 = sshll.u32 %s4816_s25, 2 }
  0x66   : > { %s630_s27 = scalar_lea.vmem %s4813_s23, %s3081_s26  ;;  %vm2368_vm14 = vcmask 520192   ;;  %vm3730_vm15 = vmmov 0  }
  0x67   : > { %v636_v1 = vld [vmem:[%s630_s27 + $0x8] sm:$0xff]  ;;  %v637_v2 = vld [vmem:[%s630_s27 + $0x10] sm:$0xff]  ;;  %v635_v3 = vld [vmem:[%s630_s27] sm:$0xff] }
  0x68   : > { %v653_v4 = vrot.slane %v636_v1, 6  ;;  %v655_v5 = vrot.slane %v637_v2, 6  ;;  %v652_v6 = vrot.slane %v635_v3, 6  ;;  %v638_v7 = vld [vmem:[%s630_s27 + $0x18] sm:$0xff]  ;;  %v639_v9 = vld [vmem:[%s630_s27 + $0x20] sm:$0xff]  ;;  %v640_v10 = vld [vmem:[%s630_s27 + $0x28] sm:$0xff] }
  0x69   : > { %v657_v8 = vrot.slane %v638_v7, 6  ;;  %v659_v15 = vrot.slane %v639_v9, 6  ;;  %v661_v16 = vrot.slane %v640_v10, 6  ;;  %v641_v17 = vld [vmem:[%s630_s27 + $0x30] sm:$0xff]  ;;  %v642_v18 = vld [vmem:[%s630_s27 + $0x38] sm:$0xff] }
  0x6a   : > { %v656_v11 = vsel %vm651_vm0, %v653_v4, %v655_v5  ;;  %v669_v12 = vsel %vm651_vm0, 0.0, %v652_v6  ;;  %v654_v14 = vsel %vm651_vm0, %v652_v6, %v653_v4  ;;  %v663_v21 = vrot.slane %v641_v17, 6  ;;  %v671_v31 = vld [vmem:[%s4814_s18] sm:$0x1f] }
  0x6b   : > { %682 = vperm.xlu1 %3504, %v656_v11   ;;  %674 = vperm.xlu0 %3503, %v669_v12   ;;  %v658_v13 = vsel %vm651_vm0, %v655_v5, %v657_v8  ;;  %v662_v19 = vsel %vm651_vm0, %v659_v15, %v661_v16  ;;  %v660_v20 = vsel %vm651_vm0, %v657_v8, %v659_v15  ;;  %v665_v22 = vrot.slane %v642_v18, 6 }
  0x6c   : > { %v664_v24 = vsel %vm651_vm0, %v661_v16, %v663_v21  ;;  %v3965_v34 = vrot.slane %v671_v31, %v724_v30  ;;  %v3970_v42 = vrot.slane %v671_v31, %v780_v35  ;;  %v3974_v44 = vrot.slane %v671_v31, %v836_v36 }
  0x6d   : > { %v666_v23 = vsel %vm651_vm0, %v663_v21, %v665_v22  ;;  %v670_v25 = vsel %vm651_vm0, %v665_v22, 0.0  ;;  %v3978_v47 = vrot.slane %v671_v31, %v707_v37  ;;  %v3980_v48 = vrot.slane %v671_v31, %v892_v40 }
  0x6f   : > { %686 = vperm.xlu1 %3504, %v658_v13   ;;  %678 = vperm.xlu0 %3503, %v654_v14  }
  0x73   : > { %694 = vperm.xlu1 %3504, %v662_v19   ;;  %690 = vperm.xlu0 %3503, %v660_v20  }
  0x77   : > { %702 = vperm.xlu1 %3504, %v666_v23   ;;  %698 = vperm.xlu0 %3503, %v664_v24  }
  0x7b   : > { %719 = vperm.xlu0 %3503, %v670_v25  }
  0xe6   : > { %v683_v32 = vpop.permute.xlu1 %682  ;;  %v675_v33 = vpop.permute.xlu0 %674 }
  0xe7   : > { %v726_v41 = vmul.f32 %v3965_v34, %v675_v33  ;;  %v728_v45 = vmul.f32 %v3965_v34, %v683_v32  ;;  %v784_v52 = vmul.f32 %v3970_v42, %v683_v32  ;;  %v840_v55 = vmul.f32 %v3974_v44, %v683_v32 }
  0xe8   : > { %v782_v56 = vmul.f32 %v3970_v42, %v675_v33  ;;  %v711_v58 = vmul.f32 %v3978_v47, %v683_v32  ;;  %v709_v59 = vmul.f32 %v3978_v47, %v675_v33  ;;  %v3994_v61 = vmul.f32 %v3980_v48, %v683_v32 }
  0xe9   : > { %v745_v49 = vrot.slane %v726_v41, 1  ;;  %v748_v54 = vrot.slane %v728_v45, 1  ;;  %v838_v2 = vmul.f32 %v3974_v44, %v675_v33  ;;  %v804_v7 = vrot.slane %v784_v52, 2 }
  0xea   : > { %v3967_v38 = vpop.permute.xlu1 %686  ;;  %v679_v39 = vpop.permute.xlu0 %678  ;;  %v860_v8 = vrot.slane %v840_v55, 3  ;;  %v801_v9 = vrot.slane %v782_v56, 2  ;;  %v916_v19 = vrot.slane %v3994_v61, 4  ;;  %v894_v21 = vmul.f32 %v3980_v48, %v675_v33 }
  0xeb   : > { %v729_v43 = vmul.f32 %v3965_v34, %v3967_v38  ;;  %v727_v46 = vmul.f32 %v3965_v34, %v679_v39  ;;  %v783_v51 = vmul.f32 %v3970_v42, %v679_v39  ;;  %v3991_v60 = vmul.f32 %v3970_v42, %v3967_v38 }
  0xec   : > { %v839_v0 = vmul.f32 %v3974_v44, %v679_v39  ;;  %v710_v4 = vmul.f32 %v3978_v47, %v679_v39  ;;  %v4005_v10 = vmul.f32 %v3974_v44, %v3967_v38  ;;  %v895_v13 = vmul.f32 %v3980_v48, %v679_v39 }
  0xed   : > { %v746_v50 = vrot.slane %v727_v46, 1  ;;  %v750_v53 = vrot.slane %v729_v43, 1  ;;  %v802_v63 = vrot.slane %v783_v51, 2  ;;  %v806_v11 = vrot.slane %v3991_v60, 2 }
  0xee   : > { %v3998_v1 = vpop.permute.xlu1 %694  ;;  %v691_v6 = vpop.permute.xlu0 %690  ;;  %v858_v17 = vrot.slane %v839_v0, 3  ;;  %v857_v20 = vrot.slane %v838_v2, 3  ;;  %v4019_v23 = vmul.f32 %v3980_v48, %v3967_v38  ;;  %v862_v28 = vrot.slane %v4005_v10, 3  ;;  %v4060_v2 = vld [vmem:[%s4790_s2] ss:$0 sm:$0xff] }
  0xef   : > { %v747_v57 = vsel %vm744_vm1, %v745_v49, %v746_v50  ;;  %v749_v62 = vsel %vm744_vm1, %v746_v50, %v748_v54  ;;  %v751_v3 = vsel %vm744_vm1, %v748_v54, %v750_v53  ;;  %v4011_v14 = vmul.f32 %v3965_v34, %v3998_v1 }
  0xf0   : > { %v770_v5 = vadd.f32 %v747_v57, %v709_v59  ;;  %v771_v12 = vadd.f32 %v749_v62, %v710_v4  ;;  %v772_v15 = vadd.f32 %v751_v3, %v711_v58  ;;  %v803_v16 = vsel %vm800_vm2, %v801_v9, %v802_v63 }
  0xf1   : > { %v730_v18 = vmul.f32 %v3965_v34, %v691_v6  ;;  %v805_v24 = vsel %vm800_vm2, %v802_v63, %v804_v7  ;;  %v786_v26 = vmul.f32 %v3970_v42, %v691_v6  ;;  %v807_v27 = vsel %vm800_vm2, %v804_v7, %v806_v11 }
  0xf2   : > { %v826_v22 = vadd.f32 %v803_v16, %v770_v5  ;;  %v827_v29 = vadd.f32 %v805_v24, %v771_v12  ;;  %v754_v30 = vrot.slane %v4011_v14, 1  ;;  %v828_v31 = vadd.f32 %v807_v27, %v772_v15  ;;  %v4044_v56 = vpop.permute.xlu0 %698  ;;  %v4065_v9 = vpop.permute.xlu1 %702  ;;  %v1204_v12 = vld [vmem:[#allocation6 + $0x38] sm:$0xff] }
  0xf3   : > { %v752_v25 = vrot.slane %v730_v18, 1  ;;  %v859_v32 = vsel %vm856_vm3, %v857_v20, %v858_v17  ;;  %v914_v33 = vrot.slane %v895_v13, 4  ;;  %v913_v36 = vrot.slane %v894_v21, 4  ;;  %v1203_v13 = vld [vmem:[#allocation6 + $0x30] sm:$0xff]  ;;  %3297 = vmatprep.subr.mxu0 %v1204_v12 }
  0xf4   : > { %v712_v37 = vmul.f32 %v3978_v47, %v3967_v38  ;;  %v882_v39 = vadd.f32 %v859_v32, %v826_v22  ;;  %v4032_v40 = vmul.f32 %v3970_v42, %v3998_v1  ;;  %v918_v41 = vrot.slane %v4019_v23, 4  ;;  %3298 = vmatpush3.msra.mxu0 %v1204_v12  ;;  %v1198_v12 = vld [vmem:[#allocation6 + $0x8] sm:$0xff] }
  0xf5   : > { %v753_v35 = vsel %vm744_vm1, %v750_v53, %v752_v25  ;;  %v861_v43 = vsel %vm856_vm3, %v858_v17, %v860_v8  ;;  %v808_v45 = vrot.slane %v786_v26, 2  ;;  %v842_v46 = vmul.f32 %v3974_v44, %v691_v6  ;;  %3299 = vmatprep.subr.mxu0 %v1203_v13 }
  0xf6   : > { %v863_v49 = vsel %vm856_vm3, %v860_v8, %v862_v28  ;;  %v883_v50 = vadd.f32 %v861_v43, %v827_v29  ;;  %v755_v51 = vsel %vm744_vm1, %v752_v25, %v754_v30  ;;  %v773_v38 = vadd.f32 %v753_v35, %v712_v37  ;;  %3300 = vmatpush3.msra.mxu0 %v1203_v13  ;;  %v1201_v29 = vld [vmem:[#allocation6 + $0x20] sm:$0xff] }
  0xf7   : > { %v884_v52 = vadd.f32 %v863_v49, %v828_v31  ;;  %v915_v53 = vsel %vm912_vm4, %v913_v36, %v914_v33  ;;  %v917_v54 = vsel %vm912_vm4, %v914_v33, %v916_v19  ;;  %v713_v55 = vmul.f32 %v3978_v47, %v691_v6 }
  0xf8   : > { %v938_v57 = vadd.f32 %v915_v53, %v882_v39  ;;  %v810_v58 = vrot.slane %v4032_v40, 2  ;;  %v4049_v59 = vmul.f32 %v3974_v44, %v3998_v1  ;;  %v4053_v60 = vmul.f32 %v3980_v48, %v3998_v1 }
  0xf9   : > { %v774_v61 = vadd.f32 %v755_v51, %v713_v55  ;;  %v809_v62 = vsel %vm800_vm2, %v806_v11, %v808_v45  ;;  %v864_v63 = vrot.slane %v842_v46, 3  ;;  %v898_v0 = vmul.f32 %v3980_v48, %v691_v6  ;;  %v1200_v51 = vld [vmem:[#allocation6 + $0x18] sm:$0xff] }
  0xfa   : > { %v919_v3 = vsel %vm912_vm4, %v916_v19, %v918_v41  ;;  %v939_v4 = vadd.f32 %v917_v54, %v883_v50  ;;  %v829_v5 = vadd.f32 %v809_v62, %v773_v38  ;;  %v732_v7 = vmul.f32 %v3965_v34, %v4044_v56  ;;  %v1199_v38 = vld [vmem:[#allocation6 + $0x10] sm:$0xff] }
  0xfb   : > { %v940_v8 = vadd.f32 %v919_v3, %v884_v52  ;;  %v866_v10 = vrot.slane %v4049_v59, 3  ;;  %v922_v11 = vrot.slane %v4053_v60, 4  ;;  %v811_v6 = vsel %vm800_vm2, %v808_v45, %v810_v58 }
  0xfc   : > { %v953_v15 = vadd.f32 %v4060_v2, %v938_v57  ;;  %v830_v16 = vadd.f32 %v811_v6, %v774_v61  ;;  %v865_v17 = vsel %vm856_vm3, %v862_v28, %v864_v63  ;;  %v920_v18 = vrot.slane %v898_v0, 4  ;;  %v1202_v28 = vld [vmem:[#allocation6 + $0x28] sm:$0xff] }
  0xfd   : > { %v954_v19 = vadd.f32 %v4060_v2, %v939_v4  ;;  %v885_v20 = vadd.f32 %v865_v17, %v829_v5  ;;  %v4077_v21 = vmul.f32 %v3965_v34, %v4065_v9  ;;  %v756_v22 = vrot.slane %v732_v7, 1  ;;  %3301 = vmatprep.subr.mxu0 %v1202_v28  ;;  %v4140_v5 = vpop.permute.xlu0 %719 }
  0xfe   : > { %v4080_v23 = vadd.f32 %v4060_v2, %v940_v8  ;;  %v4084_v24 = vmul.f32 %v3970_v42, %v4044_v56  ;;  %v714_v25 = vmul.f32 %v3978_v47, %v3998_v1  ;;  %v867_v26 = vsel %vm856_vm3, %v864_v63, %v866_v10  ;;  %3302 = vmatpush3.msra.mxu0 %v1202_v28 }
  0xff   : > { %v4093_v27 = vmul.f32 %v3970_v42, %v4065_v9  ;;  %v886_v31 = vadd.f32 %v867_v26, %v830_v16  ;;  %v921_v32 = vsel %vm912_vm4, %v918_v41, %v920_v18  ;;  %v923_v33 = vsel %vm912_vm4, %v920_v18, %v922_v11  ;;  %3303 = vmatprep.subr.mxu0 %v1201_v29  ;;  %v1197_v16 = vld [vmem:[#allocation6] sm:$0xff] }
 0x100   : > { %v969_v35 = vrot.slane %v953_v15, 6  ;;  %v941_v1 = vadd.f32 %v921_v32, %v885_v20  ;;  %v758_v36 = vrot.slane %v4077_v21, 1  ;;  %v757_v37 = vsel %vm744_vm1, %v754_v30, %v756_v22  ;;  %3304 = vmatpush3.msra.mxu0 %v1201_v29 }
 0x101   : > { %v970_v39 = vrot.slane %v954_v19, 6  ;;  %v4105_v43 = vmul.f32 %v3974_v44, %v4065_v9  ;;  %v812_v41 = vrot.slane %v4084_v24, 2  ;;  %v4110_v45 = vmul.f32 %v3974_v44, %v4044_v56  ;;  %3305 = vmatprep.subr.mxu0 %v1200_v51 }
 0x102   : > { %v972_v46 = vrot.slane %v4080_v23, 6  ;;  %v814_v49 = vrot.slane %v4093_v27, 2  ;;  %v715_v14 = vmul.f32 %v3978_v47, %v4044_v56  ;;  %v4120_v50 = vsel %vm651_vm0, 0.0, %v969_v35  ;;  %3306 = vmatpush3.msra.mxu0 %v1200_v51 }
 0x103   : > { %v4117_v30 = vsel %vm651_vm0, %v969_v35, %v970_v39  ;;  %v942_v52 = vadd.f32 %v923_v33, %v886_v31  ;;  %v775_v53 = vadd.f32 %v757_v37, %v714_v25  ;;  %v4127_v57 = vadd.f32 %v4060_v2, %v941_v1  ;;  %3307 = vmatprep.subr.mxu0 %v1199_v38 }
 0x104   : > { %v4123_v54 = vsel %vm651_vm0, %v970_v39, %v972_v46  ;;  %v998_v55 = vrot.slane %v4117_v30, 1  ;;  %v759_v61 = vsel %vm744_vm1, %v756_v22, %v758_v36  ;;  %v997_v63 = vrot.slane %v4120_v50, 1  ;;  %3308 = vmatpush3.msra.mxu0 %v1199_v38 }
 0x105   : > { %v1000_v62 = vrot.slane %v4123_v54, 1  ;;  %v813_v0 = vsel %vm800_vm2, %v810_v58, %v812_v41  ;;  %v868_v3 = vrot.slane %v4110_v45, 3  ;;  %v900_v4 = vmul.f32 %v3980_v48, %v4044_v56  ;;  %3309 = vmatprep.subr.mxu0 %v1198_v12 }
 0x106   : > { %v1039_v7 = vrot.slane %v4117_v30, 2  ;;  %v999_v6 = vsel %vm744_vm1, %v997_v63, %v998_v55  ;;  %v1041_v40 = vrot.slane %v4123_v54, 2  ;;  %v1038_v58 = vrot.slane %v4120_v50, 2  ;;  %3310 = vmatpush3.msra.mxu0 %v1198_v12 }
 0x107   : > { %v1001_v8 = vsel %vm744_vm1, %v998_v55, %v1000_v62  ;;  %v4150_v13 = vadd.f32 %v4060_v2, %v942_v52  ;;  %v776_v56 = vadd.f32 %v759_v61, %v715_v14  ;;  %v831_v15 = vadd.f32 %v813_v0, %v775_v53  ;;  %1014 = vrot.lane.b32.xlu1 %v999_v6, %s3724_s0 }
 0x108   : > { %1016 = vrot.lane.b32.xlu0 %v1001_v8, %s3724_s0  ;;  %v870_v17 = vrot.slane %v4105_v43, 3  ;;  %v4157_v18 = vmul.f32 %v3980_v48, %v4065_v9  ;;  %v734_v19 = vmul.f32 %v3965_v34, %v4140_v5  ;;  %v974_v20 = vrot.slane %v4127_v57, 6  ;;  %3311 = vmatprep.subr.mxu0 %v1197_v16 }
 0x109   : > { %v815_v22 = vsel %vm800_vm2, %v812_v41, %v814_v49  ;;  %v924_v23 = vrot.slane %v900_v4, 4  ;;  %v1080_v24 = vrot.slane %v4117_v30, 3  ;;  %v1082_v25 = vrot.slane %v4123_v54, 3  ;;  %3312 = vmatpush3.msra.mxu0 %v1197_v16 }
 0x10a   : > { %v869_v26 = vsel %vm856_vm3, %v866_v10, %v868_v3  ;;  %v1042_v34 = vsel %vm800_vm2, %v1039_v7, %v1041_v40  ;;  %v1040_v28 = vsel %vm800_vm2, %v1038_v58, %v1039_v7  ;;  %v1079_v29 = vrot.slane %v4120_v50, 3 }
 0x10b   : > { %v832_v31 = vadd.f32 %v815_v22, %v776_v56  ;;  %v887_v32 = vadd.f32 %v869_v26, %v831_v15  ;;  %1055 = vrot.lane.b32.xlu1 %v1040_v28, %s3725_s22  ;;  %v4178_v59 = vsel %vm651_vm0, %v972_v46, %v974_v20  ;;  %v976_v10 = vrot.slane %v4150_v13, 6 }
 0x10c   : > { %1057 = vrot.lane.b32.xlu0 %v1042_v34, %s3725_s22  ;;  %v926_v33 = vrot.slane %v4157_v18, 4  ;;  %v760_v35 = vrot.slane %v734_v19, 1  ;;  %v871_v1 = vsel %vm856_vm3, %v868_v3, %v870_v17  ;;  %v925_v37 = vsel %vm912_vm4, %v922_v11, %v924_v23 }
 0x10d   : > { %v790_v39 = vmul.f32 %v3970_v42, %v4140_v5  ;;  %v1083_v41 = vsel %vm856_vm3, %v1080_v24, %v1082_v25  ;;  %v1081_v45 = vsel %vm856_vm3, %v1079_v29, %v1080_v24  ;;  %v1120_v46 = vrot.slane %v4120_v50, 4 }
 0x10e   : > { %v1121_v14 = vrot.slane %v4117_v30, 4  ;;  %v1002_v51 = vrot.slane %v4178_v59, 1  ;;  %v888_v38 = vadd.f32 %v871_v1, %v832_v31  ;;  %v943_v52 = vadd.f32 %v925_v37, %v887_v32 }
 0x10f   : > { %1096 = vrot.lane.b32.xlu1 %v1081_v45, %s3726_s3  ;;  %v4200_v42 = vsel %vm651_vm0, %v974_v20, %v976_v10  ;;  %v761_v60 = vsel %vm744_vm1, %v758_v36, %v760_v35  ;;  %v716_v11 = vmul.f32 %v3978_v47, %v4065_v9  ;;  %v927_v53 = vsel %vm912_vm4, %v924_v23, %v926_v33 }
 0x110   : > { %1098 = vrot.lane.b32.xlu0 %v1083_v41, %s3726_s3  ;;  %v816_v55 = vrot.slane %v790_v39, 2  ;;  %v846_v57 = vmul.f32 %v3974_v44, %v4140_v5  ;;  %v1122_v61 = vsel %vm912_vm4, %v1120_v46, %v1121_v14  ;;  %v1003_v63 = vsel %vm744_vm1, %v1000_v62, %v1002_v51 }
 0x111   : > { %v1123_v0 = vrot.slane %v4123_v54, 4  ;;  %v1004_v21 = vrot.slane %v4200_v42, 1  ;;  %v944_v36 = vadd.f32 %v927_v53, %v888_v38  ;;  %v958_v3 = vadd.f32 %v4060_v2, %v943_v52 }
 0x112   : > { %v777_v47 = vadd.f32 %v761_v60, %v716_v11  ;;  %v817_v44 = vsel %vm800_vm2, %v814_v49, %v816_v55  ;;  %v872_v9 = vrot.slane %v846_v57, 3  ;;  %v902_v62 = vmul.f32 %v3980_v48, %v4140_v5 }
 0x113   : > { %1137 = vrot.lane.b32.xlu1 %v1122_v61, %s3727_s29  ;;  %v1124_v4 = vsel %vm912_vm4, %v1121_v14, %v1123_v0  ;;  %v1005_v7 = vsel %vm744_vm1, %v1002_v51, %v1004_v21  ;;  %v1043_v8 = vrot.slane %v4178_v59, 2  ;;  %v1045_v6 = vrot.slane %v4200_v42, 2 }
 0x114   : > { %1018 = vrot.lane.b32.xlu0 %v1003_v63, %s3724_s0  ;;  %v959_v58 = vadd.f32 %v4060_v2, %v944_v36  ;;  %v833_v12 = vadd.f32 %v817_v44, %v777_v47  ;;  %v978_v27 = vrot.slane %v958_v3, 6  ;;  %v873_v48 = vsel %vm856_vm3, %v870_v17, %v872_v9 }
 0x115   : > { %v928_v49 = vrot.slane %v902_v62, 4  ;;  %v1044_v5 = vsel %vm800_vm2, %v1041_v40, %v1043_v8  ;;  %v1046_v13 = vsel %vm800_vm2, %v1043_v8, %v1045_v6  ;;  %v1084_v56 = vrot.slane %v4178_v59, 3 }
 0x116   : > { %v1086_v15 = vrot.slane %v4200_v42, 3  ;;  %v889_v16 = vadd.f32 %v873_v48, %v833_v12  ;;  %v4243_v43 = vsel %vm651_vm0, %v976_v10, %v978_v27  ;;  %v980_v17 = vrot.slane %v959_v58, 6 }
 0x117   : > { %1139 = vrot.lane.b32.xlu1 %v1124_v4, %s3727_s29  ;;  %v929_v18 = vsel %vm912_vm4, %v926_v33, %v928_v49  ;;  %v1085_v40 = vsel %vm856_vm3, %v1082_v25, %v1084_v56  ;;  %v1125_v20 = vrot.slane %v4178_v59, 4  ;;  %v1006_v22 = vrot.slane %v4243_v43, 1 }
 0x118   : > { %1020 = vrot.lane.b32.xlu0 %v1005_v7, %s3724_s0  ;;  %v1087_v19 = vsel %vm856_vm3, %v1084_v56, %v1086_v15  ;;  %v945_v23 = vadd.f32 %v929_v18, %v889_v16  ;;  %v4255_v24 = vsel %vm651_vm0, %v978_v27, %v980_v17  ;;  %v1127_v25 = vrot.slane %v4200_v42, 4 }
 0x119   : > { %v1126_v26 = vsel %vm912_vm4, %v1123_v0, %v1125_v20  ;;  %v1007_v34 = vsel %vm744_vm1, %v1004_v21, %v1006_v22  ;;  %v1008_v28 = vrot.slane %v4255_v24, 1  ;;  %v1047_v10 = vrot.slane %v4243_v43, 2 }
 0x11a   : > { %v960_v29 = vadd.f32 %v4060_v2, %v945_v23  ;;  %v1128_v31 = vsel %vm912_vm4, %v1125_v20, %v1127_v25  ;;  %v1049_v33 = vrot.slane %v4255_v24, 2  ;;  %v1088_v37 = vrot.slane %v4243_v43, 3 }
 0x11b   : > { %1059 = vrot.lane.b32.xlu1 %v1044_v5, %s3725_s22  ;;  %v1009_v32 = vsel %vm744_vm1, %v1006_v22, %v1008_v28  ;;  %v1048_v1 = vsel %vm800_vm2, %v1045_v6, %v1047_v10  ;;  %v1090_v39 = vrot.slane %v4255_v24, 3  ;;  %v1129_v14 = vrot.slane %v4243_v43, 4 }
 0x11c   : > { %1061 = vrot.lane.b32.xlu0 %v1046_v13, %s3725_s22  ;;  %v982_v35 = vrot.slane %v960_v29, 6  ;;  %v1050_v2 = vsel %vm800_vm2, %v1047_v10, %v1049_v33  ;;  %v1089_v45 = vsel %vm856_vm3, %v1086_v15, %v1088_v37  ;;  %v1131_v11 = vrot.slane %v4255_v24, 4 }
 0x11d   : > { %v1091_v46 = vsel %vm856_vm3, %v1088_v37, %v1090_v39  ;;  %v1130_v52 = vsel %vm912_vm4, %v1127_v25, %v1129_v14 }
 0x11e   : > { %v4277_v41 = vsel %vm651_vm0, %v980_v17, %v982_v35  ;;  %v994_v38 = vsel %vm651_vm0, %v982_v35, 0.0  ;;  %v1132_v55 = vsel %vm912_vm4, %v1129_v14, %v1131_v11 }
 0x11f   : > { %1100 = vrot.lane.b32.xlu1 %v1085_v40, %s3726_s3  ;;  %v1010_v51 = vrot.slane %v4277_v41, 1  ;;  %v1012_v53 = vrot.slane %v994_v38, 1  ;;  %v1051_v61 = vrot.slane %v4277_v41, 2  ;;  %v1053_v63 = vrot.slane %v994_v38, 2 }
 0x120   : > { %1102 = vrot.lane.b32.xlu0 %v1087_v19, %s3726_s3  ;;  %v1092_v36 = vrot.slane %v4277_v41, 3  ;;  %v1094_v3 = vrot.slane %v994_v38, 3  ;;  %v1133_v9 = vrot.slane %v4277_v41, 4  ;;  %v1135_v62 = vrot.slane %v994_v38, 4 }
 0x121   : > { %v1011_v60 = vsel %vm744_vm1, %v1008_v28, %v1010_v51  ;;  %v1013_v57 = vsel %vm744_vm1, %v1010_v51, %v1012_v53  ;;  %v1052_v0 = vsel %vm800_vm2, %v1049_v33, %v1051_v61  ;;  %v1054_v21 = vsel %vm800_vm2, %v1051_v61, %v1053_v63 }
 0x122   : > { %v1093_v47 = vsel %vm856_vm3, %v1090_v39, %v1092_v36  ;;  %v1095_v44 = vsel %vm856_vm3, %v1092_v36, %v1094_v3  ;;  %v1134_v4 = vsel %vm912_vm4, %v1131_v11, %v1133_v9  ;;  %v1136_v7 = vsel %vm912_vm4, %v1133_v9, %v1135_v62 }
 0x123   : > { %1141 = vrot.lane.b32.xlu1 %v1126_v26, %s3727_s29 }
 0x124   : > { %1022 = vrot.lane.b32.xlu0 %v1007_v34, %s3724_s0 }
 0x127   : > { %1143 = vrot.lane.b32.xlu1 %v1128_v31, %s3727_s29 }
 0x128   : > { %1024 = vrot.lane.b32.xlu0 %v1009_v32, %s3724_s0 }
 0x12b   : > { %1063 = vrot.lane.b32.xlu1 %v1048_v1, %s3725_s22 }
 0x12c   : > { %1065 = vrot.lane.b32.xlu0 %v1050_v2, %s3725_s22 }
 0x12f   : > { %1104 = vrot.lane.b32.xlu1 %v1089_v45, %s3726_s3 }
 0x130   : > { %1106 = vrot.lane.b32.xlu0 %v1091_v46, %s3726_s3 }
 0x133   : > { %1145 = vrot.lane.b32.xlu1 %v1130_v52, %s3727_s29 }
 0x134   : > { %1026 = vrot.lane.b32.xlu0 %v1011_v60, %s3724_s0 }
 0x137   : > { %1147 = vrot.lane.b32.xlu1 %v1132_v55, %s3727_s29 }
 0x138   : > { %1028 = vrot.lane.b32.xlu0 %v1013_v57, %s3724_s0 }
 0x13b   : > { %1067 = vrot.lane.b32.xlu1 %v1052_v0, %s3725_s22 }
 0x13c   : > { %1069 = vrot.lane.b32.xlu0 %v1054_v21, %s3725_s22 }
 0x13f   : > { %1108 = vrot.lane.b32.xlu1 %v1093_v47, %s3726_s3 }
 0x140   : > { %1110 = vrot.lane.b32.xlu0 %v1095_v44, %s3726_s3 }
 0x143   : > { %1149 = vrot.lane.b32.xlu1 %v1134_v4, %s3727_s29 }
 0x144   : > { %1151 = vrot.lane.b32.xlu0 %v1136_v7, %s3727_s29 }
 0x179   : > { %v1015_v8 = vpop.permute.xlu1 %1014 }
 0x17a   : > { %v1017_v6 = vpop.permute.xlu0 %1016  ;;  %v1162_v49 = vsel %vm1161_vm5, %v4120_v50, %v1015_v8 }
 0x17b   : > { %v1163_v17 = vsel %vm1161_vm5, %v4117_v30, %v1017_v6 }
 0x17d   : > { %v1056_v58 = vpop.permute.xlu1 %1055 }
 0x17e   : > { %v1058_v12 = vpop.permute.xlu0 %1057  ;;  %v1171_v5 = vsel %vm1170_vm6, %v1162_v49, %v1056_v58 }
 0x17f   : > { %v1172_v18 = vsel %vm1170_vm6, %v1163_v17, %v1058_v12 }
 0x181   : > { %v1097_v27 = vpop.permute.xlu1 %1096 }
 0x182   : > { %v1099_v48 = vpop.permute.xlu0 %1098  ;;  %v1180_v13 = vsel %vm1179_vm7, %v1171_v5, %v1097_v27 }
 0x183   : > { %v1181_v40 = vsel %vm1179_vm7, %v1172_v18, %v1099_v48 }
 0x185   : > { %v1138_v56 = vpop.permute.xlu1 %1137 }
 0x186   : > { %v1019_v15 = vpop.permute.xlu0 %1018  ;;  %v1189_v16 = vsel %vm1188_vm8, %v1180_v13, %v1138_v56 }
 0x187   : > { %3313 = vmatprep.mubr.msk.f32.mxu0 %vm1214_vm9, %v1189_v16  ;;  %v1164_v25 = vsel %vm1161_vm5, %v4123_v54, %v1019_v15 }
 0x189   : > { %v1140_v50 = vpop.permute.xlu1 %1139 }
 0x18a   : > { %v1021_v19 = vpop.permute.xlu0 %1020  ;;  %v1190_v20 = vsel %vm1188_vm8, %v1181_v40, %v1140_v50 }
 0x18b   : > { %3314 = vmatmul.mubr.msk.f32.vlgmr.msra.gmra.mxu0 %vm1214_vm9, %v1190_v20  ;;  %v1165_v10 = vsel %vm1161_vm5, %v4178_v59, %v1021_v19 }
 0x18d   : > { %v1060_v22 = vpop.permute.xlu1 %1059 }
 0x18e   : > { %v1062_v23 = vpop.permute.xlu0 %1061  ;;  %v1173_v30 = vsel %vm1170_vm6, %v1164_v25, %v1060_v22 }
 0x18f   : > { %v1174_v33 = vsel %vm1170_vm6, %v1165_v10, %v1062_v23 }
 0x191   : > { %v1101_v26 = vpop.permute.xlu1 %1100 }
 0x192   : > { %v1103_v34 = vpop.permute.xlu0 %1102  ;;  %v1182_v28 = vsel %vm1179_vm7, %v1173_v30, %v1101_v26 }
 0x193   : > { %v1183_v35 = vsel %vm1179_vm7, %v1174_v33, %v1103_v34 }
 0x195   : > { %v1142_v29 = vpop.permute.xlu1 %1141 }
 0x196   : > { %v1023_v31 = vpop.permute.xlu0 %1022  ;;  %v1191_v32 = vsel %vm1188_vm8, %v1182_v28, %v1142_v29 }
 0x197   : > { %3316 = vmatprep.mubr.msk.f32.mxu0 %vm1214_vm9, %v1191_v32  ;;  %v1166_v14 = vsel %vm1161_vm5, %v4200_v42, %v1023_v31 }
 0x199   : > { %v1144_v1 = vpop.permute.xlu1 %1143 }
 0x19a   : > { %v1025_v2 = vpop.permute.xlu0 %1024  ;;  %v1192_v54 = vsel %vm1188_vm8, %v1183_v35, %v1144_v1 }
 0x19b   : > { %3317 = vmatmul.mubr.msk.f32.gmra.mxu0 %vm1214_vm9, %v1192_v54  ;;  %v1167_v11 = vsel %vm1161_vm5, %v4243_v43, %v1025_v2 }
 0x19d   : > { %v1064_v37 = vpop.permute.xlu1 %1063 }
 0x19e   : > { %v1066_v39 = vpop.permute.xlu0 %1065  ;;  %v1175_v59 = vsel %vm1170_vm6, %v1166_v14, %v1064_v37 }
 0x19f   : > { %v1176_v53 = vsel %vm1170_vm6, %v1167_v11, %v1066_v39 }
 0x1a1   : > { %v1105_v45 = vpop.permute.xlu1 %1104 }
 0x1a2   : > { %v1107_v46 = vpop.permute.xlu0 %1106  ;;  %v1184_v51 = vsel %vm1179_vm7, %v1175_v59, %v1105_v45 }
 0x1a3   : > { %v1185_v55 = vsel %vm1179_vm7, %v1176_v53, %v1107_v46 }
 0x1a5   : > { %v1146_v38 = vpop.permute.xlu1 %1145 }
 0x1a6   : > { %v1027_v52 = vpop.permute.xlu0 %1026  ;;  %v1193_v60 = vsel %vm1188_vm8, %v1184_v51, %v1146_v38 }
 0x1a7   : > { %3319 = vmatprep.mubr.msk.f32.mxu0 %vm1214_vm9, %v1193_v60  ;;  %v1168_v3 = vsel %vm1161_vm5, %v4255_v24, %v1027_v52  ;;  %v3049_v24 = vld [vmem:[%s4792_s4] ss:$0 sm:$0xff] }
 0x1a9   : > { %v1148_v57 = vpop.permute.xlu1 %1147 }
 0x1aa   : > { %v1029_v61 = vpop.permute.xlu0 %1028  ;;  %v1194_v42 = vsel %vm1188_vm8, %v1185_v55, %v1148_v57 }
 0x1ab   : > { %3320 = vmatmul.mubr.msk.f32.gmra.mxu0 %vm1214_vm9, %v1194_v42  ;;  %v1169_v43 = vsel %vm1161_vm5, %v4277_v41, %v1029_v61 }
 0x1ad   : > { %v1068_v63 = vpop.permute.xlu1 %1067 }
 0x1ae   : > { %v1070_v0 = vpop.permute.xlu0 %1069  ;;  %v1177_v47 = vsel %vm1170_vm6, %v1168_v3, %v1068_v63 }
 0x1af   : > { %v1178_v44 = vsel %vm1170_vm6, %v1169_v43, %v1070_v0 }
 0x1b1   : > { %v1109_v21 = vpop.permute.xlu1 %1108 }
 0x1b2   : > { %v1111_v36 = vpop.permute.xlu0 %1110  ;;  %v1186_v9 = vsel %vm1179_vm7, %v1177_v47, %v1109_v21 }
 0x1b3   : > { %v1187_v62 = vsel %vm1179_vm7, %v1178_v44, %v1111_v36 }
 0x1b5   : > { %v1150_v4 = vpop.permute.xlu1 %1149 }
 0x1b6   : > { %v1152_v7 = vpop.permute.xlu0 %1151  ;;  %v1195_v8 = vsel %vm1188_vm8, %v1186_v9, %v1150_v4 }
 0x1b7   : > { %v1196_v6 = vsel %vm1188_vm8, %v1187_v62, %v1152_v7  ;;  %3322 = vmatprep.mubr.msk.f32.mxu0 %vm1214_vm9, %v1195_v8  ;;  %v1566_v7 = vld [vmem:[#allocation8 + $0x48] sm:$0xff] }
 0x1b8   : > { %3323 = vmatmul.mubr.msk.f32.gmra.mxu0 %vm1214_vm9, %v1196_v6  ;;  %3325 = vmatprep.subr.mxu1 %v1566_v7 }
 0x1b9   : > { %3326 = vmatpush3.msra.mxu1 %v1566_v7 }
 0x24b   : > { %v3315_v41 = vpop.f32.mrf.mxu0 }
 0x24c   : > { %v1311_v58 = vadd.f32 %v3315_v41, %v3049_v24 }
 0x24d   : > { %v1305_v12 = vpop.f32.mrf.mxu0 }
 0x24e   : > { %v1306_v27 = vadd.f32 %v3049_v24, %v1305_v12  ;;  %v1353_v48 = vrot.slane %v1311_v58, 1  ;;  %v1384_v13 = vrot.slane %v1311_v58, 2 }
 0x250   : > { %v1352_v49 = vrot.slane %v1306_v27, 1  ;;  %v1383_v5 = vrot.slane %v1306_v27, 2 }
 0x252   : > { %v1354_v56 = vsel %vm744_vm1, %v1352_v49, %v1353_v48  ;;  %v1385_v16 = vsel %vm800_vm2, %v1383_v5, %v1384_v13 }
 0x253   : > { %v1375_v15 = vmax.f32 %v1306_v27, %v1354_v56 }
 0x255   : > { %v1406_v17 = vmax.f32 %v1375_v15, %v1385_v16  ;;  %v1565_v16 = vld [vmem:[#allocation8 + $0x40] sm:$0xff] }
 0x256   : > { %3327 = vmatprep.subr.mxu1 %v1565_v16 }
 0x257   : > { %v1414_v18 = vmax.f32 %v1406_v17, 0.0  ;;  %v1564_v17 = vld [vmem:[#allocation8 + $0x38] sm:$0xff]  ;;  %3328 = vmatpush3.msra.mxu1 %v1565_v16 }
 0x258   : > { %3329 = vmatprep.subr.mxu1 %v1564_v17 }
 0x259   : > { %1422 = vst.msk [vmem:[#allocation2] sm:$0xff] %vm1161_vm5, %v1414_v18  ;;  %3330 = vmatpush3.msra.mxu1 %v1564_v17 }
 0x25b   : > { %v3318_v40 = vpop.f32.mrf.mxu0 }
 0x25c   : > { %v1321_v50 = vadd.f32 %v3318_v40, %v3049_v24 }
 0x25d   : > { %v1315_v19 = vpop.f32.mrf.mxu0 }
 0x25e   : > { %v1316_v20 = vadd.f32 %v3049_v24, %v1315_v19  ;;  %v1357_v22 = vrot.slane %v1321_v50, 1  ;;  %v1388_v34 = vrot.slane %v1321_v50, 2 }
 0x260   : > { %v1355_v23 = vrot.slane %v1316_v20, 1  ;;  %v1386_v26 = vrot.slane %v1316_v20, 2 }
 0x262   : > { %v1356_v25 = vsel %vm744_vm1, %v1353_v48, %v1355_v23  ;;  %v1358_v30 = vsel %vm744_vm1, %v1355_v23, %v1357_v22  ;;  %v1387_v31 = vsel %vm800_vm2, %v1384_v13, %v1386_v26  ;;  %v1389_v32 = vsel %vm800_vm2, %v1386_v26, %v1388_v34  ;;  %v1563_v26 = vld [vmem:[#allocation8 + $0x30] sm:$0xff] }
 0x263   : > { %v1376_v28 = vmax.f32 %v1311_v58, %v1356_v25  ;;  %v1377_v29 = vmax.f32 %v1316_v20, %v1358_v30  ;;  %3331 = vmatprep.subr.mxu1 %v1563_v26 }
 0x264   : > { %3332 = vmatpush3.msra.mxu1 %v1563_v26 }
 0x265   : > { %v1407_v10 = vmax.f32 %v1376_v28, %v1387_v31  ;;  %v1408_v33 = vmax.f32 %v1377_v29, %v1389_v32  ;;  %v1561_v29 = vld [vmem:[#allocation8 + $0x20] sm:$0xff]  ;;  %v1560_v31 = vld [vmem:[#allocation8 + $0x18] sm:$0xff] }
 0x267   : > { %v1415_v35 = vmax.f32 %v1407_v10, 0.0  ;;  %v1416_v1 = vmax.f32 %v1408_v33, 0.0 }
 0x269   : > { %1423 = vst.msk [vmem:[#allocation2 + $0x8] sm:$0xff] %vm1161_vm5, %v1415_v35  ;;  %1424 = vst.msk [vmem:[#allocation2 + $0x10] sm:$0xff] %vm1161_vm5, %v1416_v1 }
 0x26b   : > { %v3321_v2 = vpop.f32.mrf.mxu0 }
 0x26c   : > { %v1331_v54 = vadd.f32 %v3321_v2, %v3049_v24 }
 0x26d   : > { %v1325_v37 = vpop.f32.mrf.mxu0 }
 0x26e   : > { %v1326_v39 = vadd.f32 %v3049_v24, %v1325_v37  ;;  %v1361_v45 = vrot.slane %v1331_v54, 1  ;;  %v1392_v59 = vrot.slane %v1331_v54, 2  ;;  %v1559_v37 = vld [vmem:[#allocation8 + $0x10] sm:$0xff] }
 0x270   : > { %v1359_v46 = vrot.slane %v1326_v39, 1  ;;  %v1390_v14 = vrot.slane %v1326_v39, 2  ;;  %v1431_v21 = vld [vmem:[#allocation2] ss:$2 sm:$0xff] }
 0x271   : > { %v1442_v47 = vrot.slane %v1431_v21, 6 }
 0x272   : > { %v1360_v51 = vsel %vm744_vm1, %v1357_v22, %v1359_v46  ;;  %v1362_v38 = vsel %vm744_vm1, %v1359_v46, %v1361_v45  ;;  %v1391_v11 = vsel %vm800_vm2, %v1388_v34, %v1390_v14  ;;  %v1393_v53 = vsel %vm800_vm2, %v1390_v14, %v1392_v59  ;;  %v1562_v34 = vld [vmem:[#allocation8 + $0x28] sm:$0xff] }
 0x273   : > { %v1378_v52 = vmax.f32 %v1321_v50, %v1360_v51  ;;  %v1379_v60 = vmax.f32 %v1326_v39, %v1362_v38  ;;  %v4379_v48 = vsel %vm651_vm0, 0.0, %v1442_v47  ;;  %3333 = vmatprep.subr.mxu1 %v1562_v34  ;;  %v1558_v39 = vld [vmem:[#allocation8 + $0x8] sm:$0xff] }
 0x274   : > { %v1458_v19 = vrot.slane %v4379_v48, 1  ;;  %v1478_v25 = vrot.slane %v4379_v48, 2  ;;  %3334 = vmatpush3.msra.mxu1 %v1562_v34  ;;  %v1499_v32 = vrot.slane %v4379_v48, 3 }
 0x275   : > { %v1409_v55 = vmax.f32 %v1378_v52, %v1391_v11  ;;  %v1410_v57 = vmax.f32 %v1379_v60, %v1393_v53  ;;  %3335 = vmatprep.subr.mxu1 %v1561_v29  ;;  %v1557_v60 = vld [vmem:[#allocation8] sm:$0xff] }
 0x276   : > { %3336 = vmatpush3.msra.mxu1 %v1561_v29 }
 0x277   : > { %v1417_v61 = vmax.f32 %v1409_v55, 0.0  ;;  %v1418_v42 = vmax.f32 %v1410_v57, 0.0  ;;  %3337 = vmatprep.subr.mxu1 %v1560_v31 }
 0x278   : > { %v3324_v63 = vpop.f32.mrf.mxu0  ;;  %3338 = vmatpush3.msra.mxu1 %v1560_v31 }
 0x279   : > { %1425 = vst.msk [vmem:[#allocation2 + $0x18] sm:$0xff] %vm1161_vm5, %v1417_v61  ;;  %1426 = vst.msk [vmem:[#allocation2 + $0x20] sm:$0xff] %vm1161_vm5, %v1418_v42  ;;  %v1341_v0 = vadd.f32 %v3324_v63, %v3049_v24  ;;  %3339 = vmatprep.subr.mxu1 %v1559_v37 }
 0x27a   : > { %v1335_v36 = vpop.f32.mrf.mxu0  ;;  %3340 = vmatpush3.msra.mxu1 %v1559_v37  ;;  %v1788_v37 = vld [vmem:[%s4795_s7 + $0x70] sm:$0xff] }
 0x27b   : > { %v1365_v3 = vrot.slane %v1341_v0, 1  ;;  %v1336_v43 = vadd.f32 %v3049_v24, %v1335_v36  ;;  %v1396_v9 = vrot.slane %v1341_v0, 2  ;;  %3341 = vmatprep.subr.mxu1 %v1558_v39 }
 0x27c   : > { %3342 = vmatpush3.msra.mxu1 %v1558_v39  ;;  %v1787_v39 = vld [vmem:[%s4795_s7 + $0x68] sm:$0xff] }
 0x27d   : > { %v1382_v44 = vmax.f32 %v1341_v0, %v1365_v3  ;;  %v1363_v62 = vrot.slane %v1336_v43, 1  ;;  %v1394_v4 = vrot.slane %v1336_v43, 2  ;;  %3343 = vmatprep.subr.mxu1 %v1557_v60 }
 0x27e   : > { %3344 = vmatpush3.msra.mxu1 %v1557_v60  ;;  %v1779_v60 = vld [vmem:[%s4795_s7 + $0x28] sm:$0xff] }
 0x27f   : > { %v1413_v8 = vmax.f32 %v1382_v44, %v1396_v9  ;;  %v1364_v6 = vsel %vm744_vm1, %v1361_v45, %v1363_v62  ;;  %v1366_v41 = vsel %vm744_vm1, %v1363_v62, %v1365_v3  ;;  %v1395_v49 = vsel %vm800_vm2, %v1392_v59, %v1394_v4 }
 0x280   : > { %v1380_v58 = vmax.f32 %v1331_v54, %v1364_v6  ;;  %v1381_v12 = vmax.f32 %v1336_v43, %v1366_v41  ;;  %v1433_v27 = vld [vmem:[#allocation2 + $0x10] ss:$2 sm:$0xff]  ;;  %v1397_v5 = vsel %vm800_vm2, %v1394_v4, %v1396_v9  ;;  %v1520_v45 = vrot.slane %v4379_v48, 4 }
 0x281   : > { %v1421_v24 = vmax.f32 %v1413_v8, 0.0  ;;  %v1443_v13 = vrot.slane %v1433_v27, 6 }
 0x282   : > { %v1411_v56 = vmax.f32 %v1380_v58, %v1395_v49  ;;  %v1412_v15 = vmax.f32 %v1381_v12, %v1397_v5 }
 0x283   : > { %1430 = vst.msk [vmem:[#allocation2 + $0x38] sm:$0x3f] %vm1429_vm10, %v1421_v24  ;;  %v4384_v18 = vsel %vm651_vm0, %v1442_v47, %v1443_v13 }
 0x284   : > { %v1419_v40 = vmax.f32 %v1411_v56, 0.0  ;;  %v1420_v50 = vmax.f32 %v1412_v15, 0.0  ;;  %v1459_v20 = vrot.slane %v4384_v18, 1  ;;  %v1479_v23 = vrot.slane %v4384_v18, 2 }
 0x285   : > { %v1500_v28 = vrot.slane %v4384_v18, 3  ;;  %v1521_v1 = vrot.slane %v4384_v18, 4 }
 0x286   : > { %1427 = vst.msk [vmem:[#allocation2 + $0x28] sm:$0xff] %vm1161_vm5, %v1419_v40  ;;  %1428 = vst.msk [vmem:[#allocation2 + $0x30] sm:$0xff] %vm1161_vm5, %v1420_v50  ;;  %v1460_v22 = vsel %vm744_vm1, %v1458_v19, %v1459_v20  ;;  %v1480_v30 = vsel %vm800_vm2, %v1478_v25, %v1479_v23 }
 0x287   : > { %1465 = vrot.lane.b32.xlu1 %v1460_v22, %s3724_s0  ;;  %v1501_v35 = vsel %vm856_vm3, %v1499_v32, %v1500_v28  ;;  %v1522_v51 = vsel %vm912_vm4, %v1520_v45, %v1521_v1  ;;  %v1786_v45 = vld [vmem:[%s4795_s7 + $0x60] sm:$0xff] }
 0x28b   : > { %1487 = vrot.lane.b32.xlu1 %v1480_v30, %s3725_s22 }
 0x28d   : > { %v1435_v10 = vld [vmem:[#allocation2 + $0x20] ss:$2 sm:$0xff]  ;;  %v1437_v33 = vld [vmem:[#allocation2 + $0x30] ss:$2 sm:$0x7f] }
 0x28e   : > { %v1445_v2 = vrot.slane %v1435_v10, 6  ;;  %v1447_v54 = vrot.slane %v1437_v33, 6 }
 0x28f   : > { %1508 = vrot.lane.b32.xlu1 %v1501_v35, %s3726_s3 }
 0x290   : > { %v4403_v46 = vsel %vm651_vm0, %v1445_v2, %v1447_v54  ;;  %v4406_v14 = vsel %vm651_vm0, %v1443_v13, %v1445_v2  ;;  %v1456_v43 = vsel %vm1455_vm11, %v1447_v54, 0.0  ;;  %v1789_v2 = vld [vmem:[%s4795_s7 + $0x78] sm:$0xff]  ;;  %v3728_v54 = vmov 0.0  }
 0x291   : > { %v1463_v59 = vrot.slane %v4403_v46, 1  ;;  %v1523_v38 = vrot.slane %v4406_v14, 4  ;;  %v1461_v52 = vrot.slane %v4406_v14, 1  ;;  %v1481_v55 = vrot.slane %v4406_v14, 2  ;;  %1809 = vmatprep.subr.mxu0 %v3728_v54  ;;  %2025 = vmatprep.subr.mxu1 %v3728_v54 }
 0x292   : > { %v1483_v57 = vrot.slane %v4403_v46, 2  ;;  %v1502_v63 = vrot.slane %v4406_v14, 3  ;;  %v1504_v0 = vrot.slane %v4403_v46, 3  ;;  %v1525_v3 = vrot.slane %v4403_v46, 4  ;;  %1810 = vmatpush1.msra.mxu0 %v1789_v2 }
 0x293   : > { %1529 = vrot.lane.b32.xlu1 %v1522_v51, %s3727_s29  ;;  %1471 = vrot.lane.b32.xlu0 %v1463_v59, %s3724_s0  ;;  %v1524_v11 = vsel %vm912_vm4, %v1521_v1, %v1523_v38  ;;  %v1462_v53 = vsel %vm744_vm1, %v1459_v20, %v1461_v52  ;;  %v1482_v42 = vsel %vm800_vm2, %v1479_v23, %v1481_v55  ;;  %v1485_v9 = vrot.slane %v1456_v43, 2  ;;  %v1782_v51 = vld [vmem:[%s4795_s7 + $0x40] sm:$0xff] }
 0x294   : > { %v1484_v61 = vsel %vm800_vm2, %v1481_v55, %v1483_v57  ;;  %v1505_v21 = vsel %vm856_vm3, %v1502_v63, %v1504_v0  ;;  %v1503_v36 = vsel %vm856_vm3, %v1500_v28, %v1502_v63  ;;  %v1526_v47 = vsel %vm912_vm4, %v1523_v38, %v1525_v3  ;;  %1811 = vmatprep.subr.mxu0 %v3728_v54  ;;  %v1781_v38 = vld [vmem:[%s4795_s7 + $0x38] sm:$0xff]  ;;  %v1776_v55 = vld [vmem:[%s4795_s7 + $0x10] sm:$0xff] }
 0x295   : > { %v1464_v44 = vsel %vm744_vm1, %v1461_v52, %v1463_v59  ;;  %v1486_v62 = vsel %vm800_vm2, %v1483_v57, %v1485_v9  ;;  %v1506_v4 = vrot.slane %v1456_v43, 3  ;;  %v1527_v8 = vrot.slane %v1456_v43, 4  ;;  %1812 = vmatpush1.msra.mxu0 %v1788_v37  ;;  %v1783_v59 = vld [vmem:[%s4795_s7 + $0x48] sm:$0xff]  ;;  %v1780_v52 = vld [vmem:[%s4795_s7 + $0x30] sm:$0xff] }
 0x296   : > { %1813 = vmatprep.subr.mxu0 %v3728_v54  ;;  %v1775_v57 = vld [vmem:[%s4795_s7 + $0x8] sm:$0xff] }
 0x297   : > { %1531 = vrot.lane.b32.xlu1 %v1524_v11, %s3727_s29  ;;  %1467 = vrot.lane.b32.xlu0 %v1462_v53, %s3724_s0  ;;  %v1507_v7 = vsel %vm856_vm3, %v1504_v0, %v1506_v4  ;;  %v1528_v6 = vsel %vm912_vm4, %v1525_v3, %v1527_v8  ;;  %v1778_v11 = vld [vmem:[%s4795_s7 + $0x20] sm:$0xff]  ;;  %v1777_v53 = vld [vmem:[%s4795_s7 + $0x18] sm:$0xff] }
 0x298   : > { %1814 = vmatpush1.msra.mxu0 %v1787_v39 }
 0x299   : > { %1815 = vmatprep.subr.mxu0 %v3728_v54 }
 0x29a   : > { %1816 = vmatpush1.msra.mxu0 %v1786_v45 }
 0x29b   : > { %1491 = vrot.lane.b32.xlu1 %v1484_v61, %s3725_s22  ;;  %1489 = vrot.lane.b32.xlu0 %v1482_v42, %s3725_s22  ;;  %v1774_v61 = vld [vmem:[%s4795_s7] sm:$0xff] }
 0x29c   : > { %1817 = vmatprep.subr.mxu0 %v3728_v54  ;;  %v3058_v42 = vld [vmem:[%s4794_s6] ss:$0 sm:$0xff] }
 0x29f   : > { %1512 = vrot.lane.b32.xlu1 %v1505_v21, %s3726_s3  ;;  %1510 = vrot.lane.b32.xlu0 %v1503_v36, %s3726_s3 }
 0x2a3   : > { %1533 = vrot.lane.b32.xlu1 %v1526_v47, %s3727_s29  ;;  %1469 = vrot.lane.b32.xlu0 %v1464_v44, %s3724_s0 }
 0x2a7   : > { %1493 = vrot.lane.b32.xlu0 %v1486_v62, %s3725_s22 }
 0x2ab   : > { %1514 = vrot.lane.b32.xlu0 %v1507_v7, %s3726_s3 }
 0x2af   : > { %1535 = vrot.lane.b32.xlu0 %v1528_v6, %s3727_s29  ;;  %v1793_v6 = vld [vmem:[%s4795_s7 + $0x98] sm:$0xff] }
 0x2f9   : > { %v1466_v41 = vpop.permute.xlu1 %1465 }
 0x2fa   : > { %v1541_v27 = vsel %vm1161_vm5, %v4379_v48, %v1466_v41  ;;  %v1792_v41 = vld [vmem:[%s4795_s7 + $0x90] sm:$0xff] }
 0x2fd   : > { %v1488_v58 = vpop.permute.xlu1 %1487 }
 0x2fe   : > { %v1545_v24 = vsel %vm1170_vm6, %v1541_v27, %v1488_v58  ;;  %v1791_v27 = vld [vmem:[%s4795_s7 + $0x88] sm:$0xff] }
 0x301   : > { %v1509_v12 = vpop.permute.xlu1 %1508 }
 0x302   : > { %v1549_v49 = vsel %vm1179_vm7, %v1545_v24, %v1509_v12 }
 0x305   : > { %v1530_v5 = vpop.permute.xlu1 %1529  ;;  %v1472_v13 = vpop.permute.xlu0 %1471 }
 0x306   : > { %v1553_v56 = vsel %vm1188_vm8, %v1549_v49, %v1530_v5  ;;  %v1544_v32 = vsel %vm1161_vm5, %v4403_v46, %v1472_v13  ;;  %v1785_v46 = vld [vmem:[%s4795_s7 + $0x58] sm:$0xff] }
 0x307   : > { %3345 = vmatprep.mubr.msk.f32.mxu1 %vm1214_vm9, %v1553_v56  ;;  %1818 = vmatpush1.msra.mxu0 %v1785_v46 }
 0x308   : > { %1819 = vmatprep.subr.mxu0 %v3728_v54 }
 0x309   : > { %v1532_v15 = vpop.permute.xlu1 %1531  ;;  %v1468_v16 = vpop.permute.xlu0 %1467 }
 0x30a   : > { %v1542_v50 = vsel %vm1161_vm5, %v4384_v18, %v1468_v16 }
 0x30d   : > { %v1492_v17 = vpop.permute.xlu1 %1491  ;;  %v1490_v40 = vpop.permute.xlu0 %1489 }
 0x30e   : > { %v1546_v19 = vsel %vm1170_vm6, %v1542_v50, %v1490_v40 }
 0x311   : > { %v1511_v48 = vpop.permute.xlu0 %1510  ;;  %v1513_v20 = vpop.permute.xlu1 %1512 }
 0x312   : > { %v1550_v22 = vsel %vm1179_vm7, %v1546_v19, %v1511_v48 }
 0x313   : > { %v1554_v23 = vsel %vm1188_vm8, %v1550_v22, %v1532_v15  ;;  %v1790_v15 = vld [vmem:[%s4795_s7 + $0x80] sm:$0xff] }
 0x314   : > { %3346 = vmatmul.mubr.msk.f32.vlgmr.msra.gmra.mxu1 %vm1214_vm9, %v1554_v23 }
 0x315   : > { %v1470_v26 = vpop.permute.xlu0 %1469  ;;  %v1534_v30 = vpop.permute.xlu1 %1533 }
 0x316   : > { %v1543_v34 = vsel %vm1161_vm5, %v4406_v14, %v1470_v26  ;;  %v1784_v14 = vld [vmem:[%s4795_s7 + $0x50] sm:$0xff] }
 0x317   : > { %v1547_v25 = vsel %vm1170_vm6, %v1543_v34, %v1492_v17  ;;  %1820 = vmatpush1.msra.mxu0 %v1784_v14 }
 0x318   : > { %v1551_v28 = vsel %vm1179_vm7, %v1547_v25, %v1513_v20  ;;  %1821 = vmatprep.subr.mxu0 %v3728_v54 }
 0x319   : > { %v1494_v18 = vpop.permute.xlu0 %1493  ;;  %v1555_v29 = vsel %vm1188_vm8, %v1551_v28, %v1534_v30  ;;  %1822 = vmatpush1.msra.mxu0 %v1783_v59 }
 0x31a   : > { %3348 = vmatprep.mubr.msk.f32.mxu1 %vm1214_vm9, %v1555_v29  ;;  %v1548_v10 = vsel %vm1170_vm6, %v1544_v32, %v1494_v18  ;;  %1823 = vmatprep.subr.mxu0 %v3728_v54 }
 0x31b   : > { %1824 = vmatpush1.msra.mxu0 %v1782_v51 }
 0x31c   : > { %1825 = vmatprep.subr.mxu0 %v3728_v54 }
 0x31d   : > { %v1515_v31 = vpop.permute.xlu0 %1514  ;;  %1826 = vmatpush1.msra.mxu0 %v1781_v38 }
 0x31e   : > { %v1552_v33 = vsel %vm1179_vm7, %v1548_v10, %v1515_v31  ;;  %1827 = vmatprep.subr.mxu0 %v3728_v54 }
 0x31f   : > { %1828 = vmatpush1.msra.mxu0 %v1780_v52 }
 0x320   : > { %1829 = vmatprep.subr.mxu0 %v3728_v54 }
 0x321   : > { %v1536_v35 = vpop.permute.xlu0 %1535  ;;  %1830 = vmatpush1.msra.mxu0 %v1779_v60 }
 0x322   : > { %v1556_v1 = vsel %vm1188_vm8, %v1552_v33, %v1536_v35  ;;  %1831 = vmatprep.subr.mxu0 %v3728_v54 }
 0x323   : > { %3349 = vmatmul.mubr.msk.f32.gmra.mxu1 %vm1214_vm9, %v1556_v1  ;;  %1832 = vmatpush1.msra.mxu0 %v1778_v11 }
 0x324   : > { %1833 = vmatprep.subr.mxu0 %v3728_v54 }
 0x325   : > { %1834 = vmatpush1.msra.mxu0 %v1777_v53 }
 0x326   : > { %1835 = vmatprep.subr.mxu0 %v3728_v54 }
 0x327   : > { %1836 = vmatpush1.msra.mxu0 %v1776_v55 }
 0x328   : > { %1837 = vmatprep.subr.mxu0 %v3728_v54 }
 0x329   : > { %1838 = vmatpush1.msra.mxu0 %v1775_v57 }
 0x32a   : > { %1839 = vmatprep.subr.mxu0 %v3728_v54 }
 0x32b   : > { %1840 = vmatpush1.msra.mxu0 %v1774_v61 }
 0x32c   : > { %1865 = vmatprep.subr.mxu0 %v3728_v54 }
 0x32d   : > { %1866 = vmatpush2.msra.mxu0 %v1793_v6 }
 0x32e   : > { %1867 = vmatprep.subr.mxu0 %v3728_v54 }
 0x32f   : > { %1868 = vmatpush2.msra.mxu0 %v1792_v41 }
 0x330   : > { %1869 = vmatprep.subr.mxu0 %v3728_v54 }
 0x331   : > { %1870 = vmatpush2.msra.mxu0 %v1791_v27 }
 0x332   : > { %1871 = vmatprep.subr.mxu0 %v3728_v54 }
 0x333   : > { %1872 = vmatpush2.msra.mxu0 %v1790_v15  ;;  %v2008_v15 = vld [vmem:[#allocation10 + $0x70] sm:$0xff] }
 0x3d4   : > { %v3347_v63 = vpop.f32.mrf.mxu1 }
 0x3d5   : > { %v1658_v0 = vadd.f32 %v3347_v63, %v3058_v42 }
 0x3d6   : > { %v1652_v21 = vpop.f32.mrf.mxu1 }
 0x3d7   : > { %v1653_v36 = vadd.f32 %v3058_v42, %v1652_v21  ;;  %v1676_v3 = vrot.slane %v1658_v0, 6 }
 0x3d9   : > { %v1675_v43 = vrot.slane %v1653_v36, 6 }
 0x3db   : > { %v4536_v47 = vsel %vm651_vm0, %v1675_v43, %v1676_v3  ;;  %v4539_v44 = vsel %vm651_vm0, 0.0, %v1675_v43 }
 0x3dc   : > { %v1752_v9 = vrot.slane %v4539_v44, 4  ;;  %v1753_v62 = vrot.slane %v4536_v47, 4  ;;  %v1690_v49 = vrot.slane %v4539_v44, 1  ;;  %v1710_v5 = vrot.slane %v4539_v44, 2 }
 0x3dd   : > { %v1711_v13 = vrot.slane %v4536_v47, 2  ;;  %v1691_v56 = vrot.slane %v4536_v47, 1  ;;  %v1731_v48 = vrot.slane %v4539_v44, 3  ;;  %v1732_v22 = vrot.slane %v4536_v47, 3 }
 0x3de   : > { %v1754_v4 = vsel %vm912_vm4, %v1752_v9, %v1753_v62 }
 0x3df   : > { %3064 = vmatprep.mubr.msk.f32.mxu0 %vm1170_vm6, %v1754_v4  ;;  %v1712_v23 = vsel %vm800_vm2, %v1710_v5, %v1711_v13  ;;  %v1692_v34 = vsel %vm744_vm1, %v1690_v49, %v1691_v56  ;;  %v1733_v31 = vsel %vm856_vm3, %v1731_v48, %v1732_v22  ;;  %v2002_v48 = vld [vmem:[#allocation10 + $0x40] sm:$0xff] }
 0x3e3   : > { %v3350_v7 = vpop.f32.mrf.mxu1 }
 0x3e4   : > { %v1668_v58 = vadd.f32 %v3350_v7, %v3058_v42 }
 0x3e5   : > { %v1662_v8 = vpop.f32.mrf.mxu1 }
 0x3e6   : > { %v1663_v12 = vadd.f32 %v3058_v42, %v1662_v8  ;;  %v1680_v16 = vrot.slane %v1668_v58, 6 }
 0x3e8   : > { %v1678_v24 = vrot.slane %v1663_v12, 6  ;;  %v1688_v1 = vsel %vm1455_vm11, %v1680_v16, 0.0 }
 0x3e9   : > { %v1717_v39 = vrot.slane %v1688_v1, 2  ;;  %v1738_v46 = vrot.slane %v1688_v1, 3 }
 0x3ea   : > { %v4566_v17 = vsel %vm651_vm0, %v1676_v3, %v1678_v24  ;;  %v4574_v20 = vsel %vm651_vm0, %v1678_v24, %v1680_v16  ;;  %v2007_v16 = vld [vmem:[#allocation10 + $0x68] sm:$0xff] }
 0x3eb   : > { %v1713_v40 = vrot.slane %v4566_v17, 2  ;;  %v1693_v50 = vrot.slane %v4566_v17, 1  ;;  %v1734_v19 = vrot.slane %v4566_v17, 3  ;;  %v1695_v18 = vrot.slane %v4574_v20, 1 }
 0x3ec   : > { %v1736_v33 = vrot.slane %v4574_v20, 3  ;;  %v1715_v35 = vrot.slane %v4574_v20, 2  ;;  %v1755_v57 = vrot.slane %v4566_v17, 4 }
 0x3ed   : > { %v1714_v26 = vsel %vm800_vm2, %v1711_v13, %v1713_v40  ;;  %v1694_v25 = vsel %vm744_vm1, %v1691_v56, %v1693_v50  ;;  %v1735_v29 = vsel %vm856_vm3, %v1732_v22, %v1734_v19  ;;  %v1696_v10 = vsel %vm744_vm1, %v1693_v50, %v1695_v18  ;;  %v2009_v56 = vld [vmem:[#allocation10 + $0x78] sm:$0xff]  ;;  %v2004_v50 = vld [vmem:[#allocation10 + $0x50] sm:$0xff] }
 0x3ee   : > { %v3510_v30 = vpack.i.bf16 %v1714_v26, %v1712_v23  ;;  %v3505_v28 = vpack.i.bf16 %v1694_v25, %v1692_v34  ;;  %v3515_v32 = vpack.i.bf16 %v1735_v29, %v1733_v31  ;;  %v1737_v2 = vsel %vm856_vm3, %v1734_v19, %v1736_v33  ;;  %2026 = vmatpush1.msra.mxu1 %v2009_v56  ;;  %v2003_v19 = vld [vmem:[#allocation10 + $0x48] sm:$0xff]  ;;  %v2000_v22 = vld [vmem:[#allocation10 + $0x30] sm:$0xff]  ;;  %v1998_v26 = vld [vmem:[#allocation10 + $0x20] sm:$0xff] }
 0x3ef   : > { %v1716_v37 = vsel %vm800_vm2, %v1713_v40, %v1715_v35  ;;  %v1718_v45 = vsel %vm800_vm2, %v1715_v35, %v1717_v39  ;;  %v1739_v14 = vsel %vm856_vm3, %v1736_v33, %v1738_v46  ;;  %v1756_v43 = vsel %vm912_vm4, %v1753_v62, %v1755_v57  ;;  %2027 = vmatprep.subr.mxu1 %v3728_v54  ;;  %v2005_v40 = vld [vmem:[#allocation10 + $0x58] sm:$0xff]  ;;  %v1999_v23 = vld [vmem:[#allocation10 + $0x28] sm:$0xff]  ;;  %v1996_v25 = vld [vmem:[#allocation10 + $0x10] sm:$0xff] }
 0x3f0   : > { %3511 = vrot.lane.b32.xlu0 %v3510_v30, %s3727_s29  ;;  %3506 = vrot.lane.b32.xlu1 %v3505_v28, %s3725_s22  ;;  %v1759_v62 = vrot.slane %v1688_v1, 4  ;;  %v1997_v34 = vld [vmem:[#allocation10 + $0x18] sm:$0xff]  ;;  %v1995_v30 = vld [vmem:[#allocation10 + $0x8] sm:$0xff]  ;;  %v1994_v28 = vld [vmem:[#allocation10] sm:$0xff] }
 0x3f1   : > { %2028 = vmatpush1.msra.mxu1 %v2008_v15  ;;  %v3063_v29 = vld [vmem:[%s4796_s8] ss:$0 sm:$0xff] }
 0x3f2   : > { %2029 = vmatprep.subr.mxu1 %v3728_v54 }
 0x3f3   : > { %2030 = vmatpush1.msra.mxu1 %v2007_v16 }
 0x3f4   : > { %1701 = vrot.lane.b32.xlu0 %v1696_v10, %s3725_s22  ;;  %3516 = vrot.lane.b32.xlu1 %v3515_v32, %s3729_s1 }
 0x3f5   : > { %2031 = vmatprep.subr.mxu1 %v3728_v54 }
 0x3f8   : > { %1744 = vrot.lane.b32.xlu0 %v1737_v2, %s3729_s1  ;;  %1723 = vrot.lane.b32.xlu1 %v1716_v37, %s3727_s29 }
 0x3fc   : > { %1725 = vrot.lane.b32.xlu0 %v1718_v45, %s3727_s29  ;;  %1703 = vrot.lane.b32.xlu1 %v1695_v18, %s3725_s22  ;;  %v2013_v18 = vld [vmem:[#allocation10 + $0x98] sm:$0xff] }
 0x400   : > { %1746 = vrot.lane.b32.xlu1 %v1739_v14, %s3729_s1 }
 0x462   : > { %v3512_v59 = vpop.permute.xlu0 %3511  ;;  %v3507_v51 = vpop.permute.xlu1 %3506 }
 0x463   : > { %v3508_v38 = vunpack.i.l.bf16 %v3507_v51  ;;  %v3513_v52 = vunpack.i.l.bf16 %v3512_v59  ;;  %v3509_v60 = vunpack.i.h.bf16 %v3507_v51  ;;  %v3514_v42 = vunpack.i.h.bf16 %v3512_v59 }
 0x465   : > { %v1761_v11 = vsel %vm1170_vm6, %v4539_v44, %v3508_v38  ;;  %v1762_v36 = vsel %vm1170_vm6, %v4536_v47, %v3509_v60  ;;  %v1757_v44 = vrot.slane %v4574_v20, 4 }
 0x466   : > { %v1702_v53 = vpop.permute.xlu0 %1701  ;;  %v3517_v55 = vpop.permute.xlu1 %3516  ;;  %v1765_v63 = vsel %vm1188_vm8, %v1761_v11, %v3513_v52  ;;  %v1766_v4 = vsel %vm1188_vm8, %v1762_v36, %v3514_v42 }
 0x467   : > { %v3518_v61 = vunpack.i.l.bf16 %v3517_v55  ;;  %v3519_v0 = vunpack.i.h.bf16 %v3517_v55  ;;  %v1763_v7 = vsel %vm1170_vm6, %v4566_v17, %v1702_v53  ;;  %v1758_v47 = vsel %vm912_vm4, %v1755_v57, %v1757_v44  ;;  %v2006_v17 = vld [vmem:[#allocation10 + $0x60] sm:$0xff] }
 0x468   : > { %v1760_v49 = vsel %vm912_vm4, %v1757_v44, %v1759_v62  ;;  %2032 = vmatpush1.msra.mxu1 %v2006_v17 }
 0x469   : > { %v1770_v21 = vsel %vm1769_vm12, %v1765_v63, %v3518_v61  ;;  %v1771_v8 = vsel %vm1769_vm12, %v1766_v4, %v3519_v0  ;;  %2033 = vmatprep.subr.mxu1 %v3728_v54 }
 0x46a   : > { %v1724_v3 = vpop.permute.xlu1 %1723  ;;  %1874 = vmatmul.mubr.f32.vlgmr.msra.gmra.mxu0 %v1770_v21  ;;  %v1745_v9 = vpop.permute.xlu0 %1744  ;;  %2034 = vmatpush1.msra.mxu1 %v2005_v40 }
 0x46b   : > { %3065 = vmatprep.mubr.msk.f32.mxu0 %vm1170_vm6, %v1756_v43  ;;  %v1767_v6 = vsel %vm1188_vm8, %v1763_v7, %v1724_v3  ;;  %2035 = vmatprep.subr.mxu1 %v3728_v54 }
 0x46c   : > { %v1772_v27 = vsel %vm1769_vm12, %v1767_v6, %v1745_v9  ;;  %2036 = vmatpush1.msra.mxu1 %v2004_v50 }
 0x46d   : > { %2037 = vmatprep.subr.mxu1 %v3728_v54 }
 0x46e   : > { %v1704_v41 = vpop.permute.xlu1 %1703  ;;  %1879 = vmatmul.mubr.f32.gmra.mxu0 %v1771_v8  ;;  %v1726_v58 = vpop.permute.xlu0 %1725  ;;  %2038 = vmatpush1.msra.mxu1 %v2003_v19 }
 0x46f   : > { %3066 = vmatprep.mubr.msk.f32.mxu0 %vm1170_vm6, %v1758_v47  ;;  %v1764_v12 = vsel %vm1170_vm6, %v4574_v20, %v1704_v41  ;;  %2039 = vmatprep.subr.mxu1 %v3728_v54  ;;  %v2001_v20 = vld [vmem:[#allocation10 + $0x38] sm:$0xff] }
 0x470   : > { %v1768_v5 = vsel %vm1188_vm8, %v1764_v12, %v1726_v58  ;;  %2040 = vmatpush1.msra.mxu1 %v2002_v48  ;;  %v2012_v58 = vld [vmem:[#allocation10 + $0x90] sm:$0xff]  ;;  %v2011_v12 = vld [vmem:[#allocation10 + $0x88] sm:$0xff] }
 0x471   : > { %2041 = vmatprep.subr.mxu1 %v3728_v54 }
 0x472   : > { %v1747_v24 = vpop.permute.xlu1 %1746  ;;  %1884 = vmatmul.mubr.f32.gmra.mxu0 %v1772_v27  ;;  %2042 = vmatpush1.msra.mxu1 %v2001_v20 }
 0x473   : > { %3067 = vmatprep.mubr.msk.f32.mxu0 %vm1170_vm6, %v1760_v49  ;;  %v1773_v13 = vsel %vm1769_vm12, %v1768_v5, %v1747_v24  ;;  %2043 = vmatprep.subr.mxu1 %v3728_v54  ;;  %v2010_v49 = vld [vmem:[#allocation10 + $0x80] sm:$0xff] }
 0x474   : > { %2044 = vmatpush1.msra.mxu1 %v2000_v22 }
 0x475   : > { %2045 = vmatprep.subr.mxu1 %v3728_v54 }
 0x476   : > { %1889 = vmatmul.mubr.f32.gmra.mxu0 %v1773_v13  ;;  %2046 = vmatpush1.msra.mxu1 %v1999_v23  ;;  %v2187_v23 = vld [vmem:[#allocation11 + $0x138] sm:$0xff] }
 0x477   : > { %2047 = vmatprep.subr.mxu1 %v3728_v54 }
 0x478   : > { %2048 = vmatpush1.msra.mxu1 %v1998_v26 }
 0x479   : > { %2049 = vmatprep.subr.mxu1 %v3728_v54 }
 0x47a   : > { %2050 = vmatpush1.msra.mxu1 %v1997_v34 }
 0x47b   : > { %2051 = vmatprep.subr.mxu1 %v3728_v54 }
 0x47c   : > { %2052 = vmatpush1.msra.mxu1 %v1996_v25 }
 0x47d   : > { %2053 = vmatprep.subr.mxu1 %v3728_v54 }
 0x47e   : > { %2054 = vmatpush1.msra.mxu1 %v1995_v30 }
 0x47f   : > { %2055 = vmatprep.subr.mxu1 %v3728_v54 }
 0x480   : > { %2056 = vmatpush1.msra.mxu1 %v1994_v28 }
 0x481   : > { %2081 = vmatprep.subr.mxu1 %v3728_v54 }
 0x482   : > { %2082 = vmatpush2.msra.mxu1 %v2013_v18 }
 0x483   : > { %2083 = vmatprep.subr.mxu1 %v3728_v54 }
 0x484   : > { %2084 = vmatpush2.msra.mxu1 %v2012_v58  ;;  %v2156_v58 = vld [vmem:[#allocation11 + $0x40] sm:$0xff] }
 0x485   : > { %2085 = vmatprep.subr.mxu1 %v3728_v54 }
 0x486   : > { %2086 = vmatpush2.msra.mxu1 %v2011_v12  ;;  %v2171_v12 = vld [vmem:[#allocation11 + $0xb8] sm:$0xff] }
 0x487   : > { %2087 = vmatprep.subr.mxu1 %v3728_v54 }
 0x488   : > { %2088 = vmatpush2.msra.mxu1 %v2010_v49  ;;  %v2154_v49 = vld [vmem:[#allocation11 + $0x30] sm:$0xff] }
 0x489   : > { %3351 = vmatprep.subr.mxu1 %v2187_v23 }
 0x52a   : > { %v1875_v31 = vpop.f32.mrf.mxu0 }
 0x52b   : > { %v1876_v10 = vadd.f32 %v3063_v29, %v1875_v31 }
 0x52c   : > { %v1877_v32 = vpop.f32.mrf.mxu0 }
 0x52d   : > { %v1898_v2 = vrot.slane %v1876_v10, 1  ;;  %v1913_v46 = vrot.slane %v1876_v10, 2 }
 0x52e   : > { %v1880_v33 = vpop.f32.mrf.mxu0 }
 0x52f   : > { %v1881_v35 = vadd.f32 %v3063_v29, %v1880_v33 }
 0x530   : > { %v1882_v1 = vpop.f32.mrf.mxu0 }
 0x531   : > { %v1899_v37 = vrot.slane %v1881_v35, 1  ;;  %v1914_v39 = vrot.slane %v1881_v35, 2 }
 0x532   : > { %v1885_v45 = vpop.f32.mrf.mxu0 }
 0x533   : > { %v1900_v14 = vsel %vm744_vm1, %v1898_v2, %v1899_v37  ;;  %v1886_v59 = vadd.f32 %v3063_v29, %v1885_v45  ;;  %v1915_v52 = vsel %vm800_vm2, %v1913_v46, %v1914_v39 }
 0x534   : > { %v1909_v51 = vmax.f32 %v1876_v10, %v1900_v14  ;;  %v1887_v38 = vpop.f32.mrf.mxu0 }
 0x535   : > { %v1901_v60 = vrot.slane %v1886_v59, 1  ;;  %v1916_v11 = vrot.slane %v1886_v59, 2 }
 0x536   : > { %v1924_v53 = vmax.f32 %v1909_v51, %v1915_v52  ;;  %v1890_v55 = vpop.f32.mrf.mxu0 }
 0x537   : > { %v1902_v57 = vsel %vm744_vm1, %v1899_v37, %v1901_v60  ;;  %v1891_v61 = vadd.f32 %v3063_v29, %v1890_v55  ;;  %v1917_v21 = vsel %vm800_vm2, %v1914_v39, %v1916_v11  ;;  %v2183_v55 = vld [vmem:[#allocation11 + $0x118] sm:$0xff] }
 0x538   : > { %v1928_v42 = vmax.f32 %v1924_v53, 0.0  ;;  %v1910_v63 = vmax.f32 %v1881_v35, %v1902_v57  ;;  %v1892_v0 = vpop.f32.mrf.mxu0  ;;  %v2184_v53 = vld [vmem:[#allocation11 + $0x120] sm:$0xff]  ;;  %v2182_v57 = vld [vmem:[#allocation11 + $0x110] sm:$0xff] }
 0x539   : > { %v1903_v36 = vrot.slane %v1891_v61, 1  ;;  %v1918_v3 = vrot.slane %v1891_v61, 2  ;;  %v2163_v0 = vld [vmem:[#allocation11 + $0x78] sm:$0xff] }
 0x53a   : > { %1932 = vst.msk [vmem:[#allocation3] sm:$0xff] %vm1170_vm6, %v1928_v42  ;;  %v1925_v43 = vmax.f32 %v1910_v63, %v1917_v21  ;;  %v2180_v42 = vld [vmem:[#allocation11 + $0x100] sm:$0xff]  ;;  %v2179_v63 = vld [vmem:[#allocation11 + $0xf8] sm:$0xff]  ;;  %v2178_v21 = vld [vmem:[#allocation11 + $0xf0] sm:$0xff] }
 0x53b   : > { %v1904_v44 = vsel %vm744_vm1, %v1901_v60, %v1903_v36  ;;  %v1912_v9 = vmax.f32 %v1891_v61, %v1903_v36  ;;  %v1919_v8 = vsel %vm800_vm2, %v1916_v11, %v1918_v3  ;;  %v2186_v60 = vld [vmem:[#allocation11 + $0x130] sm:$0xff]  ;;  %v2185_v11 = vld [vmem:[#allocation11 + $0x128] sm:$0xff]  ;;  %3114 = vmatprep.subr.mxu0 %v2179_v63 }
 0x53c   : > { %v1929_v4 = vmax.f32 %v1925_v43, 0.0  ;;  %v1911_v7 = vmax.f32 %v1886_v59, %v1904_v44  ;;  %v2181_v61 = vld [vmem:[#allocation11 + $0x108] sm:$0xff]  ;;  %v2162_v36 = vld [vmem:[#allocation11 + $0x70] sm:$0xff]  ;;  %3115 = vmatpush3.msra.mxu0 %v2163_v0  ;;  %v2176_v44 = vld [vmem:[#allocation11 + $0xe0] sm:$0xff] }
 0x53d   : > { %v1927_v6 = vmax.f32 %v1912_v9, %v1918_v3  ;;  %v2177_v3 = vld [vmem:[#allocation11 + $0xe8] sm:$0xff]  ;;  %3116 = vmatprep.subr.mxu0 %v2178_v21  ;;  %v2160_v9 = vld [vmem:[#allocation11 + $0x60] sm:$0xff] }
 0x53e   : > { %1933 = vst.msk [vmem:[#allocation3 + $0x8] sm:$0xff] %vm1170_vm6, %v1929_v4  ;;  %v1926_v41 = vmax.f32 %v1911_v7, %v1919_v8  ;;  %v2161_v43 = vld [vmem:[#allocation11 + $0x68] sm:$0xff]  ;;  %3117 = vmatpush3.msra.mxu0 %v2162_v36  ;;  %v2175_v4 = vld [vmem:[#allocation11 + $0xd8] sm:$0xff]  ;;  %v2174_v8 = vld [vmem:[#allocation11 + $0xd0] sm:$0xff] }
 0x53f   : > { %v1931_v47 = vmax.f32 %v1927_v6, 0.0  ;;  %3118 = vmatprep.subr.mxu0 %v2177_v3  ;;  %v2159_v7 = vld [vmem:[#allocation11 + $0x58] sm:$0xff]  ;;  %v2158_v6 = vld [vmem:[#allocation11 + $0x50] sm:$0xff] }
 0x540   : > { %v1930_v62 = vmax.f32 %v1926_v41, 0.0  ;;  %3119 = vmatpush3.msra.mxu0 %v2161_v43  ;;  %v2173_v41 = vld [vmem:[#allocation11 + $0xc8] sm:$0xff] }
 0x541   : > { %1936 = vst.msk [vmem:[#allocation3 + $0x18] sm:$0x1f] %vm1935_vm13, %v1931_v47  ;;  %3120 = vmatprep.subr.mxu0 %v2176_v44  ;;  %v2157_v47 = vld [vmem:[#allocation11 + $0x48] sm:$0xff] }
 0x542   : > { %1934 = vst.msk [vmem:[#allocation3 + $0x10] sm:$0xff] %vm1170_vm6, %v1930_v62  ;;  %3121 = vmatpush3.msra.mxu0 %v2160_v9  ;;  %v2172_v62 = vld [vmem:[#allocation11 + $0xc0] sm:$0xff] }
 0x543   : > { %3122 = vmatprep.subr.mxu0 %v2175_v4 }
 0x544   : > { %3123 = vmatpush3.msra.mxu0 %v2159_v7 }
 0x545   : > { %v1937_v27 = vld [vmem:[#allocation3] ss:$2 sm:$0xff]  ;;  %3124 = vmatprep.subr.mxu0 %v2174_v8 }
 0x546   : > { %v1942_v24 = vrot.slane %v1937_v27, 6  ;;  %3125 = vmatpush3.msra.mxu0 %v2158_v6  ;;  %v2155_v27 = vld [vmem:[#allocation11 + $0x38] sm:$0xff] }
 0x547   : > { %3126 = vmatprep.subr.mxu0 %v2173_v41  ;;  %v2428_v6 = vld [vmem:[#allocation13 + $0xf8] sm:$0xff] }
 0x548   : > { %v1948_v13 = vsel %vm651_vm0, 0.0, %v1942_v24  ;;  %3127 = vmatpush3.msra.mxu0 %v2157_v47  ;;  %v2412_v41 = vld [vmem:[#allocation13 + $0x78] sm:$0xff]  ;;  %v2427_v47 = vld [vmem:[#allocation13 + $0xf0] sm:$0xff] }
 0x549   : > { %v1939_v5 = vld [vmem:[#allocation3 + $0x10] ss:$2 sm:$0x7f]  ;;  %v1983_v16 = vrot.slane %v1948_v13, 4  ;;  %v1961_v17 = vrot.slane %v1948_v13, 2  ;;  %v1951_v48 = vrot.slane %v1948_v13, 1  ;;  %3128 = vmatprep.subr.mxu0 %v2172_v62 }
 0x54a   : > { %v1943_v56 = vrot.slane %v1939_v5, 6  ;;  %v1972_v18 = vrot.slane %v1948_v13, 3  ;;  %3129 = vmatpush3.msra.mxu0 %v2156_v58  ;;  %v2169_v5 = vld [vmem:[#allocation11 + $0xa8] sm:$0xff]  ;;  %v2411_v62 = vld [vmem:[#allocation13 + $0x70] sm:$0xff] }
 0x54b   : > { %3130 = vmatprep.subr.mxu0 %v2171_v12  ;;  %v2426_v58 = vld [vmem:[#allocation13 + $0xe8] sm:$0xff] }
 0x54c   : > { %v1944_v15 = vsel %vm651_vm0, %v1942_v24, %v1943_v56  ;;  %v1949_v40 = vsel %vm1455_vm11, %v1943_v56, 0.0  ;;  %v2170_v24 = vld [vmem:[#allocation11 + $0xb0] sm:$0xff]  ;;  %3131 = vmatpush3.msra.mxu0 %v2155_v27  ;;  %v2168_v56 = vld [vmem:[#allocation11 + $0xa0] sm:$0xff]  ;;  %v2410_v12 = vld [vmem:[#allocation13 + $0x68] sm:$0xff] }
 0x54d   : > { %v1984_v50 = vrot.slane %v1944_v15, 4  ;;  %v1962_v19 = vrot.slane %v1944_v15, 2  ;;  %v1952_v20 = vrot.slane %v1944_v15, 1  ;;  %v1986_v22 = vrot.slane %v1949_v40, 4  ;;  %3132 = vmatprep.subr.mxu0 %v2170_v24  ;;  %v2425_v27 = vld [vmem:[#allocation13 + $0xe0] sm:$0xff] }
 0x54e   : > { %v1973_v30 = vrot.slane %v1944_v15, 3  ;;  %v1975_v29 = vrot.slane %v1949_v40, 3  ;;  %v1964_v32 = vrot.slane %v1949_v40, 2  ;;  %3133 = vmatpush3.msra.mxu0 %v2154_v49  ;;  %v2166_v40 = vld [vmem:[#allocation11 + $0x90] sm:$0xff]  ;;  %v2409_v24 = vld [vmem:[#allocation13 + $0x60] sm:$0xff]  ;;  %v2424_v49 = vld [vmem:[#allocation13 + $0xd8] sm:$0xff] }
 0x54f   : > { %v1985_v26 = vsel %vm912_vm4, %v1983_v16, %v1984_v50  ;;  %v1963_v34 = vsel %vm800_vm2, %v1961_v17, %v1962_v19  ;;  %v1953_v25 = vsel %vm744_vm1, %v1951_v48, %v1952_v20  ;;  %v1987_v28 = vsel %vm912_vm4, %v1984_v50, %v1986_v22  ;;  %3134 = vmatprep.subr.mxu0 %v2169_v5  ;;  %v2167_v16 = vld [vmem:[#allocation11 + $0x98] sm:$0xff]  ;;  %v2150_v50 = vld [vmem:[#allocation11 + $0x10] sm:$0xff] }
 0x550   : > { %3069 = vmatprep.mubr.msk.f32.mxu1 %vm1170_vm6, %v1985_v26  ;;  %1966 = vrot.lane.b32.xlu1 %v1963_v34, %s3727_s29  ;;  %v1974_v31 = vsel %vm856_vm3, %v1972_v18, %v1973_v30  ;;  %v1976_v10 = vsel %vm856_vm3, %v1973_v30, %v1975_v29  ;;  %v1965_v33 = vsel %vm800_vm2, %v1962_v19, %v1964_v32  ;;  %v2151_v17 = vld [vmem:[#allocation11 + $0x18] sm:$0xff]  ;;  %v3068_v19 = vld [vmem:[%s4798_s10] ss:$0 sm:$0xff] }
 0x551   : > { %1954 = vrot.lane.b32.xlu0 %v1953_v25, %s3725_s22  ;;  %v2165_v26 = vld [vmem:[#allocation11 + $0x88] sm:$0xff]  ;;  %v2164_v25 = vld [vmem:[#allocation11 + $0x80] sm:$0xff]  ;;  %v2408_v5 = vld [vmem:[#allocation13 + $0x58] sm:$0xff] }
 0x552   : > { %v2149_v34 = vld [vmem:[#allocation11 + $0x8] sm:$0xff] }
 0x554   : > { %1956 = vrot.lane.b32.xlu1 %v1952_v20, %s3725_s22 }
 0x555   : > { %1977 = vrot.lane.b32.xlu0 %v1974_v31, %s3729_s1 }
 0x558   : > { %1979 = vrot.lane.b32.xlu1 %v1976_v10, %s3729_s1  ;;  %s634_s1 = scalar_lea.vmem %s4805_s17, %s3047_s19 }
 0x559   : > { %1968 = vrot.lane.b32.xlu0 %v1965_v33, %s3727_s29 }
 0x5c2   : > { %v1967_v35 = vpop.permute.xlu1 %1966 }
 0x5c3   : > { %v1955_v1 = vpop.permute.xlu0 %1954 }
 0x5c4   : > { %v1988_v2 = vsel %vm1170_vm6, %v1948_v13, %v1955_v1  ;;  %v2153_v13 = vld [vmem:[#allocation11 + $0x28] sm:$0xff] }
 0x5c5   : > { %v1990_v39 = vsel %vm1188_vm8, %v1988_v2, %v1967_v35  ;;  %3135 = vmatpush3.msra.mxu0 %v2153_v13  ;;  %v2423_v13 = vld [vmem:[#allocation13 + $0xd0] sm:$0xff] }
 0x5c6   : > { %v1957_v37 = vpop.permute.xlu1 %1956  ;;  %3136 = vmatprep.subr.mxu0 %v2168_v56  ;;  %v2407_v56 = vld [vmem:[#allocation13 + $0x50] sm:$0xff] }
 0x5c7   : > { %v1978_v45 = vpop.permute.xlu0 %1977  ;;  %v1989_v59 = vsel %vm1170_vm6, %v1944_v15, %v1957_v37  ;;  %v2152_v15 = vld [vmem:[#allocation11 + $0x20] sm:$0xff] }
 0x5c8   : > { %v1992_v46 = vsel %vm1769_vm12, %v1990_v39, %v1978_v45  ;;  %3137 = vmatpush3.msra.mxu0 %v2152_v15  ;;  %v2422_v15 = vld [vmem:[#allocation13 + $0xc8] sm:$0xff] }
 0x5c9   : > { %2090 = vmatmul.mubr.f32.vlgmr.msra.gmra.mxu1 %v1992_v46  ;;  %3138 = vmatprep.subr.mxu0 %v2167_v16  ;;  %v2406_v16 = vld [vmem:[#allocation13 + $0x48] sm:$0xff] }
 0x5ca   : > { %3070 = vmatprep.mubr.msk.f32.mxu1 %vm1170_vm6, %v1987_v28  ;;  %v1980_v14 = vpop.permute.xlu1 %1979  ;;  %3352 = vmatpush3.msra.mxu1 %v2187_v23  ;;  %v2148_v28 = vld [vmem:[#allocation11] sm:$0xff] }
 0x5cb   : > { %v1969_v51 = vpop.permute.xlu0 %1968  ;;  %3353 = vmatprep.subr.mxu1 %v2186_v60  ;;  %3139 = vmatpush3.msra.mxu0 %v2151_v17  ;;  %v2421_v17 = vld [vmem:[#allocation13 + $0xc0] sm:$0xff] }
 0x5cc   : > { %v1991_v38 = vsel %vm1188_vm8, %v1989_v59, %v1969_v51  ;;  %3354 = vmatpush3.msra.mxu1 %v2186_v60  ;;  %3140 = vmatprep.subr.mxu0 %v2166_v40  ;;  %v2405_v40 = vld [vmem:[#allocation13 + $0x40] sm:$0xff] }
 0x5cd   : > { %v1993_v52 = vsel %vm1769_vm12, %v1991_v38, %v1980_v14  ;;  %3355 = vmatprep.subr.mxu1 %v2185_v11  ;;  %3141 = vmatpush3.msra.mxu0 %v2150_v50  ;;  %v2420_v50 = vld [vmem:[#allocation13 + $0xb8] sm:$0xff] }
 0x5ce   : > { %2095 = vmatmul.mubr.f32.gmra.mxu1 %v1993_v52  ;;  %3142 = vmatprep.subr.mxu0 %v2165_v26  ;;  %v2417_v26 = vld [vmem:[#allocation13 + $0xa0] sm:$0xff] }
 0x5cf   : > { %3356 = vmatpush3.msra.mxu1 %v2185_v11  ;;  %3143 = vmatpush3.msra.mxu0 %v2149_v34  ;;  %v2401_v34 = vld [vmem:[#allocation13 + $0x20] sm:$0xff] }
 0x5d0   : > { %3357 = vmatprep.subr.mxu1 %v2184_v53  ;;  %3144 = vmatprep.subr.mxu0 %v2164_v25  ;;  %v2416_v25 = vld [vmem:[#allocation13 + $0x98] sm:$0xff] }
 0x5d1   : > { %3358 = vmatpush3.msra.mxu1 %v2184_v53  ;;  %3145 = vmatpush3.msra.mxu0 %v2148_v28  ;;  %v2415_v28 = vld [vmem:[#allocation13 + $0x90] sm:$0xff] }
 0x5d2   : > { %3359 = vmatprep.subr.mxu1 %v2183_v55 }
 0x5d3   : > { %3360 = vmatpush3.msra.mxu1 %v2183_v55 }
 0x5d4   : > { %3361 = vmatprep.subr.mxu1 %v2182_v57 }
 0x5d5   : > { %3362 = vmatpush3.msra.mxu1 %v2182_v57 }
 0x5d6   : > { %3363 = vmatprep.subr.mxu1 %v2181_v61 }
 0x5d7   : > { %3364 = vmatpush3.msra.mxu1 %v2181_v61 }
 0x5d8   : > { %3365 = vmatprep.subr.mxu1 %v2180_v42 }
 0x5d9   : > { %3366 = vmatpush3.msra.mxu1 %v2180_v42 }
 0x5da   : > { %3162 = vmatprep.subr.mxu1 %v2428_v6 }
 0x689   : > { %v2091_v48 = vpop.f32.mrf.mxu1 }
 0x68a   : > { %v2092_v20 = vadd.f32 %v3068_v19, %v2091_v48  ;;  %v2419_v48 = vld [vmem:[#allocation13 + $0xb0] sm:$0xff] }
 0x68b   : > { %v2093_v22 = vpop.f32.mrf.mxu1 }
 0x68c   : > { %v2102_v23 = vrot.slane %v2092_v20, 6  ;;  %v2403_v20 = vld [vmem:[#allocation13 + $0x30] sm:$0xff]  ;;  %v2418_v22 = vld [vmem:[#allocation13 + $0xa8] sm:$0xff] }
 0x68e   : > { %v2096_v30 = vpop.f32.mrf.mxu1  ;;  %v2108_v31 = vsel %vm651_vm0, 0.0, %v2102_v23 }
 0x68f   : > { %v2097_v18 = vadd.f32 %v3068_v19, %v2096_v30  ;;  %v2139_v2 = vrot.slane %v2108_v31, 4  ;;  %v2111_v39 = vrot.slane %v2108_v31, 1  ;;  %v2128_v45 = vrot.slane %v2108_v31, 3  ;;  %v2404_v19 = vld [vmem:[#allocation13 + $0x38] sm:$0xff] }
 0x690   : > { %v2098_v29 = vpop.f32.mrf.mxu1  ;;  %v2121_v63 = vrot.slane %v2108_v31, 2  ;;  %v2400_v30 = vld [vmem:[#allocation13 + $0x18] sm:$0xff] }
 0x691   : > { %v2103_v32 = vrot.slane %v2097_v18, 6  ;;  %v2399_v18 = vld [vmem:[#allocation13 + $0x10] sm:$0xff]  ;;  %v2414_v29 = vld [vmem:[#allocation13 + $0x88] sm:$0xff] }
 0x693   : > { %v2104_v10 = vsel %vm651_vm0, %v2102_v23, %v2103_v32  ;;  %v2109_v33 = vsel %vm1455_vm11, %v2103_v32, 0.0  ;;  %v2402_v23 = vld [vmem:[#allocation13 + $0x28] sm:$0xff] }
 0x694   : > { %v2131_v35 = vrot.slane %v2109_v33, 3  ;;  %v2142_v1 = vrot.slane %v2109_v33, 4  ;;  %v2140_v37 = vrot.slane %v2104_v10, 4  ;;  %v2112_v46 = vrot.slane %v2104_v10, 1  ;;  %v3071_v32 = vld [vmem:[%s4800_s12] ss:$0 sm:$0xff] }
 0x695   : > { %v2129_v14 = vrot.slane %v2104_v10, 3  ;;  %v2122_v55 = vrot.slane %v2104_v10, 2  ;;  %v2124_v57 = vrot.slane %v2109_v33, 2 }
 0x696   : > { %v2141_v59 = vsel %vm912_vm4, %v2139_v2, %v2140_v37  ;;  %v2143_v51 = vsel %vm912_vm4, %v2140_v37, %v2142_v1  ;;  %v2113_v52 = vsel %vm744_vm1, %v2111_v39, %v2112_v46 }
 0x697   : > { %3367 = vmatprep.mubr.msk.f32.mxu1 %vm1188_vm8, %v2141_v59  ;;  %v2132_v38 = vsel %vm856_vm3, %v2129_v14, %v2131_v35  ;;  %v2130_v60 = vsel %vm856_vm3, %v2128_v45, %v2129_v14  ;;  %v2123_v3 = vsel %vm800_vm2, %v2121_v63, %v2122_v55  ;;  %v2125_v4 = vsel %vm800_vm2, %v2122_v55, %v2124_v57 }
 0x698   : > { %3368 = vmatmul.mubr.msk.f32.vlgmr.msra.gmra.mxu1 %vm1188_vm8, %v2143_v51  ;;  %v3525_v11 = vpack.i.bf16 %v2112_v46, %v2132_v38  ;;  %v3520_v53 = vpack.i.bf16 %v2113_v52, %v2130_v60 }
 0x699   : > { %3163 = vmatpush3.msra.mxu1 %v2412_v41 }
 0x69a   : > { %3526 = vrot.lane.b32.xlu1 %v3525_v11, %s3727_s29  ;;  %3521 = vrot.lane.b32.xlu0 %v3520_v53, %s3727_s29 }
 0x69b   : > { %3164 = vmatprep.subr.mxu1 %v2427_v47 }
 0x69c   : > { %3165 = vmatpush3.msra.mxu1 %v2411_v62  ;;  %v2638_v62 = vld [vmem:[#allocation14 + $0xf8] sm:$0xff] }
 0x69d   : > { %3166 = vmatprep.subr.mxu1 %v2426_v58  ;;  %v2622_v58 = vld [vmem:[#allocation14 + $0x78] sm:$0xff]  ;;  %3206 = vmatprep.subr.mxu0 %v2638_v62  ;;  %v2611_v62 = vld [vmem:[#allocation14 + $0x20] sm:$0xff] }
 0x69e   : > { %3167 = vmatpush3.msra.mxu1 %v2410_v12  ;;  %v2637_v12 = vld [vmem:[#allocation14 + $0xf0] sm:$0xff] }
 0x69f   : > { %3168 = vmatprep.subr.mxu1 %v2425_v27  ;;  %v2621_v27 = vld [vmem:[#allocation14 + $0x70] sm:$0xff] }
 0x6a0   : > { %3169 = vmatpush3.msra.mxu1 %v2409_v24  ;;  %v2636_v24 = vld [vmem:[#allocation14 + $0xe8] sm:$0xff] }
 0x6a1   : > { %3170 = vmatprep.subr.mxu1 %v2424_v49  ;;  %v2620_v49 = vld [vmem:[#allocation14 + $0x68] sm:$0xff] }
 0x6a2   : > { %3171 = vmatpush3.msra.mxu1 %v2408_v5  ;;  %v2635_v5 = vld [vmem:[#allocation14 + $0xe0] sm:$0xff] }
 0x6a3   : > { %3172 = vmatprep.subr.mxu1 %v2423_v13  ;;  %v2619_v13 = vld [vmem:[#allocation14 + $0x60] sm:$0xff] }
 0x6a4   : > { %3173 = vmatpush3.msra.mxu1 %v2407_v56  ;;  %v2634_v56 = vld [vmem:[#allocation14 + $0xd8] sm:$0xff] }
 0x6a5   : > { %3174 = vmatprep.subr.mxu1 %v2422_v15 }
 0x6a6   : > { %3175 = vmatpush3.msra.mxu1 %v2406_v16 }
 0x6a7   : > { %3176 = vmatprep.subr.mxu1 %v2421_v17 }
 0x6a8   : > { %3177 = vmatpush3.msra.mxu1 %v2405_v40 }
 0x6a9   : > { %3178 = vmatprep.subr.mxu1 %v2420_v50 }
 0x6aa   : > { %3179 = vmatpush3.msra.mxu1 %v2404_v19 }
 0x6ab   : > { %3180 = vmatprep.subr.mxu1 %v2419_v48 }
 0x6ac   : > { %3181 = vmatpush3.msra.mxu1 %v2403_v20 }
 0x6ad   : > { %3182 = vmatprep.subr.mxu1 %v2418_v22  ;;  %v2436_v22 = vld [vmem:[#allocation13 + $0x138] sm:$0xff] }
 0x6ae   : > { %3183 = vmatpush3.msra.mxu1 %v2402_v23  ;;  %v2435_v23 = vld [vmem:[#allocation13 + $0x130] sm:$0xff] }
 0x6af   : > { %3184 = vmatprep.subr.mxu1 %v2417_v26  ;;  %v2434_v26 = vld [vmem:[#allocation13 + $0x128] sm:$0xff] }
 0x6b0   : > { %3185 = vmatpush3.msra.mxu1 %v2401_v34  ;;  %v2433_v34 = vld [vmem:[#allocation13 + $0x120] sm:$0xff] }
 0x6b1   : > { %3186 = vmatprep.subr.mxu1 %v2416_v25  ;;  %v2432_v25 = vld [vmem:[#allocation13 + $0x118] sm:$0xff] }
 0x6b2   : > { %3187 = vmatpush3.msra.mxu1 %v2400_v30  ;;  %v2431_v30 = vld [vmem:[#allocation13 + $0x110] sm:$0xff] }
 0x6b3   : > { %3188 = vmatprep.subr.mxu1 %v2415_v28  ;;  %v2430_v28 = vld [vmem:[#allocation13 + $0x108] sm:$0xff] }
 0x6b4   : > { %3189 = vmatpush3.msra.mxu1 %v2399_v18 }
 0x6b5   : > { %3190 = vmatprep.subr.mxu1 %v2414_v29 }
 0x70c   : > { %v3527_v61 = vpop.permute.xlu1 %3526  ;;  %v3522_v42 = vpop.permute.xlu0 %3521 }
 0x70d   : > { %v3528_v0 = vunpack.i.l.bf16 %v3527_v61  ;;  %v3524_v21 = vunpack.i.h.bf16 %v3522_v42  ;;  %v3523_v36 = vunpack.i.l.bf16 %v3522_v42  ;;  %v3529_v9 = vunpack.i.h.bf16 %v3527_v61 }
 0x70f   : > { %v2146_v43 = vsel %vm1188_vm8, %v2123_v3, %v3523_v36  ;;  %v2144_v44 = vsel %vm1188_vm8, %v2108_v31, %v3524_v21  ;;  %v2147_v7 = vsel %vm1188_vm8, %v2125_v4, %v3528_v0  ;;  %v2145_v8 = vsel %vm1188_vm8, %v2104_v10, %v3529_v9  ;;  %v2398_v21 = vld [vmem:[#allocation13 + $0x8] sm:$0xff]  ;;  %v2413_v36 = vld [vmem:[#allocation13 + $0x80] sm:$0xff] }
 0x710   : > { %2263 = vmatprep.mubr.f32.mxu0 %v2146_v43  ;;  %v2397_v3 = vld [vmem:[#allocation13] sm:$0xff]  ;;  %3191 = vmatpush3.msra.mxu1 %v2398_v21  ;;  %v2614_v21 = vld [vmem:[#allocation14 + $0x38] sm:$0xff] }
 0x711   : > { %2264 = vmatmul.mubr.f32.vlgmr.msra.gmra.mxu0 %v2144_v44  ;;  %3192 = vmatprep.subr.mxu1 %v2413_v36  ;;  %v2647_v36 = vld [vmem:[#allocation14 + $0x140] sm:$0xff] }
 0x712   : > { %2268 = vmatprep.mubr.f32.mxu0 %v2147_v7  ;;  %3193 = vmatpush3.msra.mxu1 %v2397_v3  ;;  %v2629_v3 = vld [vmem:[#allocation14 + $0xb0] sm:$0xff] }
 0x713   : > { %3370 = vmatprep.subr.mxu1 %v3728_v54  ;;  %3207 = vmatpush3.msra.mxu0 %v2622_v58  ;;  %v2644_v58 = vld [vmem:[#allocation14 + $0x128] sm:$0xff] }
 0x714   : > { %3208 = vmatprep.subr.mxu0 %v2637_v12  ;;  %v2626_v12 = vld [vmem:[#allocation14 + $0x98] sm:$0xff] }
 0x715   : > { %2269 = vmatmul.mubr.f32.gmra.mxu0 %v2145_v8 }
 0x716   : > { %3209 = vmatpush3.msra.mxu0 %v2621_v27  ;;  %v2659_v27 = vld [vmem:[#allocation14 + $0x1a0] sm:$0xff] }
 0x717   : > { %3210 = vmatprep.subr.mxu0 %v2636_v24  ;;  %v2610_v24 = vld [vmem:[#allocation14 + $0x18] sm:$0xff] }
 0x718   : > { %3211 = vmatpush3.msra.mxu0 %v2620_v49  ;;  %v2643_v49 = vld [vmem:[#allocation14 + $0x120] sm:$0xff] }
 0x719   : > { %3212 = vmatprep.subr.mxu0 %v2635_v5  ;;  %v2625_v5 = vld [vmem:[#allocation14 + $0x90] sm:$0xff] }
 0x71a   : > { %3213 = vmatpush3.msra.mxu0 %v2619_v13  ;;  %v2658_v13 = vld [vmem:[#allocation14 + $0x198] sm:$0xff] }
 0x71b   : > { %3214 = vmatprep.subr.mxu0 %v2634_v56  ;;  %v2609_v56 = vld [vmem:[#allocation14 + $0x10] sm:$0xff] }
 0x758   : > { %v3369_v35 = vpop.f32.mrf.mxu1 }
 0x75a   : > { %v2340_v45 = vpop.f32.mrf.mxu1 }
 0x7d1   : > { %v3146_v31 = vpop.f32.mrf.mxu0 }
 0x7d3   : > { %v3147_v10 = vpop.f32.mrf.mxu0 }
 0x7d4   : > { %v3148_v33 = vadd.f32 %v3147_v10, %v3146_v31  ;;  %v2429_v31 = vld [vmem:[#allocation13 + $0x100] sm:$0xff]  ;;  %v2654_v10 = vld [vmem:[#allocation14 + $0x178] sm:$0xff] }
 0x7d5   : > { %v3149_v1 = vpop.f32.mrf.mxu0 }
 0x7d6   : > { %v2266_v2 = vadd.f32 %v3148_v33, %v3071_v32 }
 0x7d7   : > { %v3150_v37 = vpop.f32.mrf.mxu0 }
 0x7d8   : > { %v3151_v39 = vadd.f32 %v3150_v37, %v3149_v1  ;;  %v2341_v46 = vadd.f32 %v2340_v45, %v2266_v2  ;;  %v2653_v1 = vld [vmem:[#allocation14 + $0x170] sm:$0xff]  ;;  %v2668_v2 = vld [vmem:[#allocation14 + $0x1e8] sm:$0xff]  ;;  %v2618_v45 = vld [vmem:[#allocation14 + $0x58] sm:$0xff] }
 0x7d9   : > { %v2652_v37 = vld [vmem:[#allocation14 + $0x168] sm:$0xff]  ;;  %3215 = vmatpush3.msra.mxu0 %v2618_v45  ;;  %v2686_v45 = vld [vmem:[#allocation14 + $0x278] sm:$0xff] }
 0x7da   : > { %v2271_v14 = vadd.f32 %v3151_v39, %v3071_v32  ;;  %v2351_v51 = vrot.slane %v2341_v46, 1  ;;  %v2358_v60 = vrot.slane %v2341_v46, 2  ;;  %v2670_v32 = vld [vmem:[#allocation14 + $0x1f8] sm:$0xff]  ;;  %v2667_v39 = vld [vmem:[#allocation14 + $0x1e0] sm:$0xff] }
 0x7dc   : > { %v2346_v59 = vadd.f32 %v3369_v35, %v2271_v14  ;;  %v2669_v35 = vld [vmem:[#allocation14 + $0x1f0] sm:$0xff] }
 0x7dd   : > { %v2633_v14 = vld [vmem:[#allocation14 + $0xd0] sm:$0xff] }
 0x7de   : > { %v2352_v38 = vrot.slane %v2346_v59, 1  ;;  %v2359_v52 = vrot.slane %v2346_v59, 2  ;;  %3216 = vmatprep.subr.mxu0 %v2633_v14 }
 0x7e0   : > { %v2353_v11 = vsel %vm744_vm1, %v2351_v51, %v2352_v38  ;;  %v2357_v53 = vmax.f32 %v2346_v59, %v2352_v38  ;;  %v2360_v57 = vsel %vm800_vm2, %v2358_v60, %v2359_v52  ;;  %v2666_v59 = vld [vmem:[#allocation14 + $0x1d8] sm:$0xff]  ;;  %v2617_v51 = vld [vmem:[#allocation14 + $0x50] sm:$0xff]  ;;  %vm3077_vm1 = vmneg %vm651_vm0 }
 0x7e1   : > { %v2356_v55 = vmax.f32 %v2341_v46, %v2353_v11  ;;  %v2651_v46 = vld [vmem:[#allocation14 + $0x160] sm:$0xff]  ;;  %v2650_v38 = vld [vmem:[#allocation14 + $0x158] sm:$0xff]  ;;  %3217 = vmatpush3.msra.mxu0 %v2617_v51  ;;  %v2665_v60 = vld [vmem:[#allocation14 + $0x1d0] sm:$0xff] }
 0x7e2   : > { %v2364_v61 = vmax.f32 %v2357_v53, %v2359_v52  ;;  %v2632_v52 = vld [vmem:[#allocation14 + $0xc8] sm:$0xff]  ;;  %v2649_v53 = vld [vmem:[#allocation14 + $0x150] sm:$0xff] }
 0x7e3   : > { %v2363_v42 = vmax.f32 %v2356_v55, %v2360_v57  ;;  %v2616_v11 = vld [vmem:[#allocation14 + $0x48] sm:$0xff]  ;;  %3218 = vmatprep.subr.mxu0 %v2632_v52  ;;  %v2631_v55 = vld [vmem:[#allocation14 + $0xc0] sm:$0xff]  ;;  %v2685_v51 = vld [vmem:[#allocation14 + $0x270] sm:$0xff] }
 0x7e4   : > { %v2366_v63 = vmax.f32 %v2364_v61, 0.0  ;;  %v2664_v57 = vld [vmem:[#allocation14 + $0x1c8] sm:$0xff]  ;;  %v2615_v61 = vld [vmem:[#allocation14 + $0x40] sm:$0xff]  ;;  %3219 = vmatpush3.msra.mxu0 %v2616_v11  ;;  %v2681_v11 = vld [vmem:[#allocation14 + $0x250] sm:$0xff] }
 0x7e5   : > { %v2365_v0 = vmax.f32 %v2363_v42, 0.0  ;;  %v2648_v42 = vld [vmem:[#allocation14 + $0x148] sm:$0xff]  ;;  %3220 = vmatprep.subr.mxu0 %v2631_v55  ;;  %v2683_v52 = vld [vmem:[#allocation14 + $0x260] sm:$0xff] }
 0x7e6   : > { %2369 = vst.msk [vmem:[#allocation4 + $0x8] sm:$0x1f] %vm2368_vm14, %v2366_v63  ;;  %v2630_v63 = vld [vmem:[#allocation14 + $0xb8] sm:$0xff]  ;;  %3221 = vmatpush3.msra.mxu0 %v2615_v61  ;;  %v2679_v55 = vld [vmem:[#allocation14 + $0x240] sm:$0xff]  ;;  %v2677_v61 = vld [vmem:[#allocation14 + $0x230] sm:$0xff] }
 0x7e7   : > { %2367 = vst.msk [vmem:[#allocation4] sm:$0xff] %vm1188_vm8, %v2365_v0  ;;  %v2663_v0 = vld [vmem:[#allocation14 + $0x1c0] sm:$0xff]  ;;  %3222 = vmatprep.subr.mxu0 %v2630_v63 }
 0x7e8   : > { %3223 = vmatpush3.msra.mxu0 %v2614_v21  ;;  %v2675_v63 = vld [vmem:[#allocation14 + $0x220] sm:$0xff]  ;;  %v2673_v21 = vld [vmem:[#allocation14 + $0x210] sm:$0xff] }
 0x7e9   : > { %3224 = vmatprep.subr.mxu0 %v2629_v3 }
 0x7ee   : > { %v2370_v43 = vld [vmem:[#allocation4] ss:$2 sm:$0x7f] }
 0x7ef   : > { %v2372_v44 = vrot.slane %v2370_v43, 6  ;;  %v2662_v43 = vld [vmem:[#allocation14 + $0x1b8] sm:$0xff] }
 0x7f1   : > { %v4711_v9 = vsel %vm651_vm0, 0.0, %v2372_v44  ;;  %v4714_v4 = vsel %vm1455_vm11, %v2372_v44, 0.0  ;;  %v2613_v44 = vld [vmem:[#allocation14 + $0x30] sm:$0xff] }
 0x7f2   : > { %v2377_v7 = vrot.slane %v4711_v9, 1  ;;  %v2386_v8 = vrot.slane %v4711_v9, 3  ;;  %v2387_v6 = vrot.slane %v4714_v4, 3  ;;  %v2382_v15 = vrot.slane %v4711_v9, 2  ;;  %3225 = vmatpush3.msra.mxu0 %v2613_v44  ;;  %v2671_v44 = vld [vmem:[#allocation14 + $0x200] sm:$0xff] }
 0x7f3   : > { %v2383_v16 = vrot.slane %v4714_v4, 2  ;;  %v2392_v18 = vrot.slane %v4711_v9, 4  ;;  %v2393_v29 = vrot.slane %v4714_v4, 4  ;;  %v2628_v4 = vld [vmem:[#allocation14 + $0xa8] sm:$0xff] }
 0x7f4   : > { %v2388_v41 = vsel %vm856_vm3, %v2386_v8, %v2387_v6  ;;  %v2612_v8 = vld [vmem:[#allocation14 + $0x28] sm:$0xff]  ;;  %v2645_v6 = vld [vmem:[#allocation14 + $0x130] sm:$0xff]  ;;  %3226 = vmatprep.subr.mxu0 %v2628_v4 }
 0x7f5   : > { %v3530_v47 = vpack.i.bf16 %v2377_v7, %v2388_v41  ;;  %v2384_v19 = vsel %vm800_vm2, %v2382_v15, %v2383_v16  ;;  %v2394_v33 = vsel %vm912_vm4, %v2392_v18, %v2393_v29  ;;  %v2661_v7 = vld [vmem:[#allocation14 + $0x1b0] sm:$0xff]  ;;  %v2627_v41 = vld [vmem:[#allocation14 + $0xa0] sm:$0xff]  ;;  %3227 = vmatpush3.msra.mxu0 %v2612_v8  ;;  %v2642_v15 = vld [vmem:[#allocation14 + $0x118] sm:$0xff] }
 0x7f6   : > { %3228 = vmatprep.subr.mxu0 %v2627_v41  ;;  %v2624_v16 = vld [vmem:[#allocation14 + $0x88] sm:$0xff] }
 0x7f7   : > { %3531 = vrot.lane.b32.xlu0 %v3530_v47, %s3727_s29  ;;  %v2660_v47 = vld [vmem:[#allocation14 + $0x1a8] sm:$0xff]  ;;  %3229 = vmatpush3.msra.mxu0 %v2611_v62 }
 0x7f8   : > { %3230 = vmatprep.subr.mxu0 %v2626_v12  ;;  %v3076_v41 = vld [vmem:[%s4804_s16] ss:$0 sm:$0xff] }
 0x7f9   : > { %3231 = vmatpush3.msra.mxu0 %v2610_v24 }
 0x7fa   : > { %3232 = vmatprep.subr.mxu0 %v2625_v5 }
 0x7fb   : > { %3233 = vmatpush3.msra.mxu0 %v2609_v56 }
 0x7fc   : > { %3234 = vmatprep.subr.mxu0 %v2624_v16 }
 0x869   : > { %v3532_v17 = vpop.permute.xlu0 %3531 }
 0x86a   : > { %v3534_v40 = vunpack.i.h.bf16 %v3532_v17  ;;  %v3533_v50 = vunpack.i.l.bf16 %v3532_v17  ;;  %v2657_v17 = vld [vmem:[#allocation14 + $0x190] sm:$0xff] }
 0x86c   : > { %v2396_v48 = vsel %vm1188_vm8, %v2384_v19, %v3533_v50  ;;  %v2395_v20 = vsel %vm1188_vm8, %v4711_v9, %v3534_v40  ;;  %v2646_v9 = vld [vmem:[#allocation14 + $0x138] sm:$0xff]  ;;  %v2608_v40 = vld [vmem:[#allocation14 + $0x8] sm:$0xff]  ;;  %v2641_v50 = vld [vmem:[#allocation14 + $0x110] sm:$0xff] }
 0x86d   : > { %2510 = vmatprep.mubr.f32.mxu1 %v2396_v48  ;;  %v2623_v19 = vld [vmem:[#allocation14 + $0x80] sm:$0xff]  ;;  %v2656_v48 = vld [vmem:[#allocation14 + $0x188] sm:$0xff]  ;;  %3235 = vmatpush3.msra.mxu0 %v2608_v40 }
 0x86e   : > { %2511 = vmatmul.mubr.f32.vlgmr.msra.gmra.mxu1 %v2395_v20  ;;  %v2607_v20 = vld [vmem:[#allocation14] sm:$0xff]  ;;  %3236 = vmatprep.subr.mxu0 %v2623_v19 }
 0x86f   : > { %3371 = vmatpush3.msra.mxu1 %v2436_v22  ;;  %3386 = vmatprep.mubr.msk.f32.mxu1 %vm3730_vm15, %v3728_v54  ;;  %v2640_v22 = vld [vmem:[#allocation14 + $0x108] sm:$0xff] }
 0x870   : > { %3372 = vmatprep.subr.mxu1 %v3728_v54  ;;  %3237 = vmatpush3.msra.mxu0 %v2607_v20 }
 0x871   : > { %3373 = vmatpush3.msra.mxu1 %v2435_v23  ;;  %v2655_v23 = vld [vmem:[#allocation14 + $0x180] sm:$0xff]  ;;  %3389 = vmatprep.subr.mxu0 %v3728_v54 }
 0x872   : > { %3374 = vmatprep.subr.mxu1 %v3728_v54 }
 0x873   : > { %3375 = vmatpush3.msra.mxu1 %v2434_v26  ;;  %v2639_v26 = vld [vmem:[#allocation14 + $0x100] sm:$0xff] }
 0x874   : > { %3376 = vmatprep.subr.mxu1 %v3728_v54 }
 0x875   : > { %3377 = vmatpush3.msra.mxu1 %v2433_v34 }
 0x876   : > { %3378 = vmatprep.subr.mxu1 %v3728_v54 }
 0x877   : > { %3379 = vmatpush3.msra.mxu1 %v2432_v25 }
 0x878   : > { %3380 = vmatprep.subr.mxu1 %v3728_v54 }
 0x879   : > { %3381 = vmatpush3.msra.mxu1 %v2431_v30 }
 0x87a   : > { %3382 = vmatprep.subr.mxu1 %v3728_v54 }
 0x87b   : > { %3383 = vmatpush3.msra.mxu1 %v2430_v28  ;;  %v3074_v28 = vld [vmem:[%s4802_s14] ss:$0 sm:$0xff] }
 0x87c   : > { %3384 = vmatprep.subr.mxu1 %v3728_v54 }
 0x87d   : > { %3385 = vmatpush3.msra.mxu1 %v2429_v31 }
 0x87e   : > { %3387 = vmatmul.mubr.msk.f32.vlgmr.msra.gmra.mxu1 %vm1188_vm8, %v2394_v33  ;;  %3241 = vmatprep.subr.mxu1 %v2670_v32 }
 0x87f   : > { %3242 = vmatpush3.msra.mxu1 %v2654_v10 }
 0x880   : > { %3243 = vmatprep.subr.mxu1 %v2669_v35 }
 0x881   : > { %3244 = vmatpush3.msra.mxu1 %v2653_v1 }
 0x882   : > { %3245 = vmatprep.subr.mxu1 %v2668_v2 }
 0x883   : > { %3246 = vmatpush3.msra.mxu1 %v2652_v37 }
 0x884   : > { %3247 = vmatprep.subr.mxu1 %v2667_v39 }
 0x885   : > { %3248 = vmatpush3.msra.mxu1 %v2651_v46 }
 0x886   : > { %3249 = vmatprep.subr.mxu1 %v2666_v59 }
 0x887   : > { %3250 = vmatpush3.msra.mxu1 %v2650_v38  ;;  %v2684_v38 = vld [vmem:[#allocation14 + $0x268] sm:$0xff] }
 0x888   : > { %3251 = vmatprep.subr.mxu1 %v2665_v60  ;;  %v2682_v60 = vld [vmem:[#allocation14 + $0x258] sm:$0xff] }
 0x889   : > { %3252 = vmatpush3.msra.mxu1 %v2649_v53  ;;  %v2680_v53 = vld [vmem:[#allocation14 + $0x248] sm:$0xff] }
 0x88a   : > { %3253 = vmatprep.subr.mxu1 %v2664_v57  ;;  %v2678_v57 = vld [vmem:[#allocation14 + $0x238] sm:$0xff] }
 0x88b   : > { %3254 = vmatpush3.msra.mxu1 %v2648_v42  ;;  %v2676_v42 = vld [vmem:[#allocation14 + $0x228] sm:$0xff] }
 0x88c   : > { %3255 = vmatprep.subr.mxu1 %v2663_v0  ;;  %v2674_v0 = vld [vmem:[#allocation14 + $0x218] sm:$0xff] }
 0x88d   : > { %3256 = vmatpush3.msra.mxu1 %v2647_v36  ;;  %v2672_v36 = vld [vmem:[#allocation14 + $0x208] sm:$0xff] }
 0x88e   : > { %3257 = vmatprep.subr.mxu1 %v2662_v43 }
 0x88f   : > { %3258 = vmatpush3.msra.mxu1 %v2646_v9 }
 0x890   : > { %3259 = vmatprep.subr.mxu1 %v2661_v7 }
 0x891   : > { %3260 = vmatpush3.msra.mxu1 %v2645_v6 }
 0x892   : > { %3261 = vmatprep.subr.mxu1 %v2660_v47 }
 0x893   : > { %3262 = vmatpush3.msra.mxu1 %v2644_v58 }
 0x894   : > { %3263 = vmatprep.subr.mxu1 %v2659_v27 }
 0x895   : > { %3264 = vmatpush3.msra.mxu1 %v2643_v49 }
 0x896   : > { %3265 = vmatprep.subr.mxu1 %v2658_v13 }
 0x897   : > { %3266 = vmatpush3.msra.mxu1 %v2642_v15 }
 0x898   : > { %3267 = vmatprep.subr.mxu1 %v2657_v17 }
 0x899   : > { %3268 = vmatpush3.msra.mxu1 %v2641_v50 }
 0x89a   : > { %3269 = vmatprep.subr.mxu1 %v2656_v48 }
 0x89b   : > { %3270 = vmatpush3.msra.mxu1 %v2640_v22 }
 0x89c   : > { %3271 = vmatprep.subr.mxu1 %v2655_v23 }
 0x89d   : > { %3272 = vmatpush3.msra.mxu1 %v2639_v26 }
 0x92e   : > { %v3194_v34 = vpop.f32.mrf.mxu1 }
 0x930   : > { %v3195_v25 = vpop.f32.mrf.mxu1 }
 0x931   : > { %v3196_v30 = vadd.f32 %v3195_v25, %v3194_v34 }
 0x933   : > { %v2513_v18 = vadd.f32 %v3196_v30, %v3074_v28 }
 0x93e   : > { %v2582_v29 = vpop.f32.mrf.mxu1 }
 0x93f   : > { %v2583_v31 = vadd.f32 %v2582_v29, %v2513_v18 }
 0x940   : > { %v3388_v32 = vpop.f32.mrf.mxu1 }
 0x941   : > { %v2587_v10 = vrot.slane %v2583_v31, 6 }
 0x943   : > { %v4745_v33 = vsel %vm651_vm0, 0.0, %v2587_v10  ;;  %v4748_v35 = vsel %vm1455_vm11, %v2587_v10, 0.0 }
 0x944   : > { %v2596_v1 = vrot.slane %v4748_v35, 2  ;;  %v2592_v2 = vrot.slane %v4745_v33, 1  ;;  %v2599_v37 = vrot.slane %v4745_v33, 3  ;;  %v2600_v39 = vrot.slane %v4748_v35, 3 }
 0x945   : > { %v2595_v46 = vrot.slane %v4745_v33, 2  ;;  %v2604_v3 = vrot.slane %v4748_v35, 4  ;;  %v2603_v43 = vrot.slane %v4745_v33, 4 }
 0x946   : > { %2758 = vmatprep.mubr.f32.mxu0 %v2592_v2  ;;  %v2601_v14 = vsel %vm856_vm3, %v2599_v37, %v2600_v39 }
 0x947   : > { %3078 = vmatmul.mubr.msk.f32.vlgmr.msra.gmra.mxu0 %vm3077_vm1, %v2587_v10  ;;  %v2597_v59 = vsel %vm800_vm2, %v2595_v46, %v2596_v1  ;;  %2828 = vmatprep.mubr.f32.mxu1 %v2601_v14  ;;  %v2605_v9 = vsel %vm912_vm4, %v2603_v43, %v2604_v3 }
 0x948   : > { %3390 = vmatpush3.msra.mxu0 %v2686_v45  ;;  %2829 = vmatmul.mubr.f32.vlgmr.msra.gmra.mxu1 %v2597_v59 }
 0x949   : > { %3391 = vmatprep.subr.mxu0 %v3728_v54  ;;  %3421 = vmatprep.mubr.msk.f32.mxu0 %vm3730_vm15, %v3728_v54 }
 0x94a   : > { %3392 = vmatpush3.msra.mxu0 %v2685_v51 }
 0x94b   : > { %3393 = vmatprep.subr.mxu0 %v3728_v54 }
 0x94c   : > { %3394 = vmatpush3.msra.mxu0 %v2684_v38 }
 0x94d   : > { %3395 = vmatprep.subr.mxu0 %v3728_v54 }
 0x94e   : > { %3396 = vmatpush3.msra.mxu0 %v2683_v52 }
 0x94f   : > { %3397 = vmatprep.subr.mxu0 %v3728_v54 }
 0x950   : > { %3398 = vmatpush3.msra.mxu0 %v2682_v60 }
 0x951   : > { %3399 = vmatprep.subr.mxu0 %v3728_v54 }
 0x952   : > { %3400 = vmatpush3.msra.mxu0 %v2681_v11 }
 0x953   : > { %3401 = vmatprep.subr.mxu0 %v3728_v54 }
 0x954   : > { %3402 = vmatpush3.msra.mxu0 %v2680_v53 }
 0x955   : > { %3403 = vmatprep.subr.mxu0 %v3728_v54 }
 0x956   : > { %3404 = vmatpush3.msra.mxu0 %v2679_v55 }
 0x957   : > { %3405 = vmatprep.subr.mxu0 %v3728_v54 }
 0x958   : > { %3406 = vmatpush3.msra.mxu0 %v2678_v57 }
 0x959   : > { %3407 = vmatprep.subr.mxu0 %v3728_v54 }
 0x95a   : > { %3408 = vmatpush3.msra.mxu0 %v2677_v61 }
 0x95b   : > { %3409 = vmatprep.subr.mxu0 %v3728_v54 }
 0x95c   : > { %3410 = vmatpush3.msra.mxu0 %v2676_v42 }
 0x95d   : > { %3411 = vmatprep.subr.mxu0 %v3728_v54 }
 0x95e   : > { %3412 = vmatpush3.msra.mxu0 %v2675_v63 }
 0x95f   : > { %3413 = vmatprep.subr.mxu0 %v3728_v54 }
 0x960   : > { %3414 = vmatpush3.msra.mxu0 %v2674_v0 }
 0x961   : > { %3415 = vmatprep.subr.mxu0 %v3728_v54 }
 0x962   : > { %3416 = vmatpush3.msra.mxu0 %v2673_v21 }
 0x963   : > { %3417 = vmatprep.subr.mxu0 %v3728_v54 }
 0x964   : > { %3418 = vmatpush3.msra.mxu0 %v2672_v36 }
 0x965   : > { %3419 = vmatprep.subr.mxu0 %v3728_v54 }
 0x966   : > { %3420 = vmatpush3.msra.mxu0 %v2671_v44 }
 0x967   : > { %3422 = vmatmul.mubr.f32.vlgmr.msra.gmra.mxu0 %v2605_v9 }
 0xa07   : > { %v3238_v4 = vpop.f32.mrf.mxu0 }
 0xa08   : > { %v3273_v7 = vpop.f32.mrf.mxu1 }
 0xa09   : > { %v3239_v8 = vpop.f32.mrf.mxu0 }
 0xa0a   : > { %v3240_v6 = vadd.f32 %v3239_v8, %v3238_v4  ;;  %v3274_v47 = vpop.f32.mrf.mxu1 }
 0xa0b   : > { %v3275_v58 = vadd.f32 %v3274_v47, %v3273_v7 }
 0xa0c   : > { %v2761_v62 = vadd.f32 %v3240_v6, %v3076_v41 }
 0xa0e   : > { %v2831_v12 = vadd.f32 %v3275_v58, %v2761_v62 }
 0xa27   : > { %v2900_v27 = vpop.f32.mrf.mxu0 }
 0xa28   : > { %v2901_v24 = vadd.f32 %v2900_v27, %v2831_v12 }
 0xa29   : > { %v3423_v54 = vpop.f32.mrf.mxu0 }
 0xa2a   : > { %v2905_v49 = vrot.slane %v2901_v24, 1  ;;  %v2908_v13 = vrot.slane %v2901_v24, 2 }
 0xa2c   : > { %v2907_v5 = vmax.f32 %v2901_v24, %v2905_v49 }
 0xa2e   : > { %v2910_v56 = vmax.f32 %v2907_v5, %v2908_v13 }
 0xa30   : > { %v2911_v15 = vmax.f32 %v2910_v56, 0.0 }
 0xa32   : > { %2912 = vst [vmem:[#allocation5] sm:$0x1f] %v2911_v15 }
 0xa39   : > { %v2913_v16 = vld [vmem:[#allocation5] ss:$2 sm:$0x7] }
 0xa3a   : > { %2914 = vst [vmem:[%s634_s1] sm:$0x7] %v2913_v16 }
 0xa3b PF: > { %s31_s24 = sadd.s32 1, %s3713_s24  }
 0xa3c   : > { %p28_p2 = scmp.ge.s32.totalorder %s31_s24, 4  }
 0xa3e   :  { %30 = sbr.rel (!%p28_p2) target bundleno = 8 (0x8), region = 147 }
 0xa43   :  { %2934 = vsyncpa [#allocation7], 1 }
 0xa44   :  { %2936 = vsyncpa [#allocation7 + $0x1], 1 }
 0xa45   :  { %2937 = vsyncpa [#allocation9], 1 }
 0xa46   :  { %2938 = vsyncpa [#allocation12], 1 }
 0xa47   :  { %2939 = vsyncpa [#allocation15], 1 }

</bundles_post_ra>
